<compile_context>
chip_gen: v6e
topology: v6e:2x2x1
jax: 0.10.0
libtpu: 0.0.40
codegen_flags: <defaults>
</compile_context>

<pallas_src>
import jax
import jax.numpy as jnp
from jax import lax
from jax.experimental import pallas as pl
from jax.experimental.pallas import tpu as pltpu

EPS = 1e-5
HPAD = 128                      # hidden width 64 padded to the 128-lane vreg width
CPAD = 128                      # num_classes padded to the 128-lane vreg width
VMEM_LIMIT = 32 * 1024 * 1024   # explicit scoped-VMEM cap, safe on v5e/v6e/v7x


def _pick_tile(n, preferred=(256, 128)):
    for t in preferred:
        if n >= t and n % t == 0:
            return t
    return n


# --------------------- kernel 1: tiled GCN aggregation + BN partial stats ---------------------
def gcn_aggregate_kernel(x_ref, w_ref, adj_ref, h_ref, st_ref):
    k = pl.program_id(1)

    @pl.when(k == 0)
    def _():
        h_ref[...] = jnp.zeros_like(h_ref)

    # Feature transform for this K tile of source nodes: [TK, Fin] @ [Fin, HPAD] as a
    # Fin-term VPU FMA (Fin=2 is far too small for the MXU).  The recompute across the
    # 'parallel' node-tile axis is ~1/TN of the aggregation FLOPs -> negligible.
    xk = x_ref[...].astype(jnp.float32)          # x.float() in torch
    w = w_ref[...]
    fin = xk.shape[1]
    xw = xk[:, 0:1] * w[0:1, :]
    for f in range(1, fin):
        xw = xw + xk[:, f:f + 1] * w[f:f + 1, :]

    # Aggregation: adj tile (bf16) @ xw tile (bf16), f32 accumulation directly into the
    # resident output block (same block index across the k axis).  GCN bias intentionally
    # dropped: training-mode BN subtracts the per-lane mean, cancelling it exactly.
    h_ref[...] += jnp.dot(adj_ref[...], xw.astype(jnp.bfloat16),
                          preferred_element_type=jnp.float32)

    # Per-node-tile BatchNorm partial stats (sum, sumsq) emitted once per node tile so the
    # full h never has to be re-scanned.  Padded node rows are exactly 0 (zero features,
    # self-loop only), so they contribute nothing; the valid-node count divides later.
    @pl.when(k == pl.num_programs(1) - 1)
    def _():
        a = h_ref[...]
        s = jnp.sum(a, axis=0, keepdims=True)
        ss = jnp.sum(a * a, axis=0, keepdims=True)
        st_ref[...] = jnp.concatenate([s, ss], axis=0)[None, :, :]


# ------------- kernel 2: BN affine + ReLU + slab max-pool + residual blocks + fc -------------
def graph_head_kernel(h_ref, valid_ref, scale_ref, shift_ref,
                      rw1_ref, rb1_ref, rw2_ref, rb2_ref,
                      fcw_ref, fcb_ref, o_ref):
    tg = o_ref.shape[0]
    npp = h_ref.shape[0] // tg

    # BatchNorm (global batch stats folded into per-lane scale/shift) + ReLU.
    h = h_ref[...] * scale_ref[...] + shift_ref[...]
    h = jnp.maximum(h, 0.0)
    # Zero padded node slots: post-ReLU features are >= 0, so a zeroed pad row never wins
    # the max below.  [N,1] mask multiply replaces the old [G,N,HPAD] broadcast.
    h = h * valid_ref[...]

    # global_max_pool: each graph owns a contiguous NPP-row slab -> reshape + max over slab.
    g = jnp.max(h.reshape(tg, npp, HPAD), axis=1)          # [TG, HPAD]

    # layer1..layer4.  TODO(synk): `ResBlock` is an undefined constructor argument in the
    # source module; implemented as a dimension-preserving residual MLP block
    # (linear-relu-linear + skip + relu); `ei` is unused by these graph-level blocks.
    nblk = rw1_ref.shape[0]

    def body(i, gv):
        t = jnp.dot(gv.astype(jnp.bfloat16), rw1_ref[i],
                    preferred_element_type=jnp.float32) + rb1_ref[i]
        t = jnp.maximum(t, 0.0)
        t = jnp.dot(t.astype(jnp.bfloat16), rw2_ref[i],
                    preferred_element_type=jnp.float32) + rb2_ref[i]
        return jnp.maximum(t + gv, 0.0)

    g = lax.fori_loop(0, nblk, body, g, unroll=True)

    # global_mean_pool at graph granularity is the identity here; final fc, lane-dense out.
    # TODO(synk): source declares fc = Linear(512 * expansion, num_classes), inconsistent
    # with the 64-dim features that reach it; fc uses the hidden width.
    o_ref[...] = jnp.dot(g.astype(jnp.bfloat16), fcw_ref[...],
                         preferred_element_type=jnp.float32) + fcb_ref[...]


# ------------------------------------ wrapper / glue ------------------------------------
def resnet_forward(params, x, adj_bf16, valid, num_graphs, nodes_per_graph):
    """Two pallas_calls (BN's global reduction is the barrier between them).

    Layout contract: nodes are sorted by graph, every graph owns a contiguous slab of
    `nodes_per_graph` node slots (multiple of 8); padded slots have zero features, no edges,
    and valid == 0.  Returns [num_graphs, num_classes]."""
    N_pad, fin = x.shape
    assert nodes_per_graph % 8 == 0
    G_pad = N_pad // nodes_per_graph
    assert G_pad * nodes_per_graph == N_pad

    # ---- call 1: tiled aggregation + partial BN stats
    tn = _pick_tile(N_pad)
    tk = _pick_tile(N_pad)
    nt = N_pad // tn
    grid1 = (nt, N_pad // tk)

    operands1 = (x, params["conv1_w"], adj_bf16)
    flops1 = 2 * N_pad * N_pad * HPAD + 2 * N_pad * fin * HPAD * nt
    bytes1 = (sum(int(a.size) * a.dtype.itemsize for a in operands1)
              + N_pad * HPAD * 4 + nt * 2 * HPAD * 4)

    h, stats = pl.pallas_call(
        gcn_aggregate_kernel,
        out_shape=(jax.ShapeDtypeStruct((N_pad, HPAD), jnp.float32),
                   jax.ShapeDtypeStruct((nt, 2, HPAD), jnp.float32)),
        grid_spec=pltpu.PrefetchScalarGridSpec(
            num_scalar_prefetch=0,
            grid=grid1,
            in_specs=[pl.BlockSpec((tk, fin), lambda i, k: (k, 0)),
                      pl.BlockSpec((fin, HPAD), lambda i, k: (0, 0)),
                      pl.BlockSpec((tn, tk), lambda i, k: (i, k))],
            out_specs=[pl.BlockSpec((tn, HPAD), lambda i, k: (i, 0)),
                       pl.BlockSpec((1, 2, HPAD), lambda i, k: (i, 0, 0))]),
        compiler_params=pltpu.CompilerParams(
            dimension_semantics=("parallel", "arbitrary"),
            vmem_limit_bytes=VMEM_LIMIT),
        cost_estimate=pl.CostEstimate(flops=int(flops1), transcendentals=0,
                                      bytes_accessed=int(bytes1)),
    )(*operands1)

    # ---- BN stat finalize: tiny [nt,2,128] -> two [1,128] vectors of glue (not kernel work)
    n = jnp.maximum(jnp.sum(valid), 1.0)
    s = jnp.sum(stats[:, 0:1, :], axis=0)              # [1, HPAD]
    ss = jnp.sum(stats[:, 1:2, :], axis=0)              # [1, HPAD]
    mean = s / n
    var = jnp.maximum(ss / n - mean * mean, 0.0)
    scale = params["bn_gamma"] * lax.rsqrt(var + EPS)    # [1, HPAD]
    shift = params["bn_beta"] - mean * scale             # [1, HPAD]

    # ---- call 2: per-graph head on graph tiles (batch graphs so matmul M is occupied)
    tg = 128 if G_pad % 128 == 0 else G_pad
    grid2 = (G_pad // tg,)
    slab = tg * nodes_per_graph
    nblk = params["res_w1"].shape[0]

    operands2 = (h, valid, scale, shift,
                 params["res_w1"], params["res_b1"], params["res_w2"], params["res_b2"],
                 params["fc_w"], params["fc_b"])
    flops2 = (nblk * 2 * 2 * G_pad * HPAD * HPAD + 2 * G_pad * HPAD * CPAD
              + G_pad * nodes_per_graph * HPAD)
    bytes2 = sum(int(a.size) * a.dtype.itemsize for a in operands2) + G_pad * CPAD * 4

    out_pad = pl.pallas_call(
        graph_head_kernel,
        out_shape=jax.ShapeDtypeStruct((G_pad, CPAD), jnp.float32),
        grid_spec=pltpu.PrefetchScalarGridSpec(
            num_scalar_prefetch=0,
            grid=grid2,
            in_specs=[pl.BlockSpec((slab, HPAD), lambda g: (g, 0)),
                      pl.BlockSpec((slab, 1), lambda g: (g, 0)),
                      pl.BlockSpec((1, HPAD), lambda g: (0, 0)),
                      pl.BlockSpec((1, HPAD), lambda g: (0, 0)),
                      pl.BlockSpec(params["res_w1"].shape, lambda g: (0, 0, 0)),
                      pl.BlockSpec(params["res_b1"].shape, lambda g: (0, 0, 0)),
                      pl.BlockSpec(params["res_w2"].shape, lambda g: (0, 0, 0)),
                      pl.BlockSpec(params["res_b2"].shape, lambda g: (0, 0, 0)),
                      pl.BlockSpec(params["fc_w"].shape, lambda g: (0, 0)),
                      pl.BlockSpec(params["fc_b"].shape, lambda g: (0, 0))],
            out_specs=pl.BlockSpec((tg, CPAD), lambda g: (g, 0))),
        compiler_params=pltpu.CompilerParams(
            dimension_semantics=("parallel",),
            vmem_limit_bytes=VMEM_LIMIT),
        cost_estimate=pl.CostEstimate(flops=int(flops2), transcendentals=0,
                                      bytes_accessed=int(bytes2)),
    )(*operands2)

    return out_pad[:num_graphs, :params["num_classes"]]


def gcn_norm_adj(ei, num_nodes):
    """Dense D^-1/2 (A + I) D^-1/2 (messages src -> dst); built once, stored bf16."""
    A = jnp.zeros((num_nodes, num_nodes), jnp.float32)
    A = A.at[ei[1], ei[0]].add(1.0)
    A = A + jnp.eye(num_nodes, dtype=jnp.float32)
    deg = jnp.sum(A, axis=1)
    dinv = lax.rsqrt(jnp.maximum(deg, 1e-12))
    return (dinv[:, None] * A * dinv[None, :]).astype(jnp.bfloat16)


def init_params(key, num_classes=3, layer_list=(2, 2, 2, 2), hidden=64, in_feats=2):
    nblk = int(sum(layer_list))
    ki = iter(jax.random.split(key, 2 * nblk + 2))

    def pad2(a, rows, cols):
        return jnp.pad(a, ((0, rows - a.shape[0]), (0, cols - a.shape[1])))

    conv1_w = pad2(0.1 * jax.random.normal(next(ki), (in_feats, hidden), jnp.float32),
                   in_feats, HPAD)
    w1s, w2s = [], []
    for _ in range(nblk):
        w1s.append(pad2(0.1 * jax.random.normal(next(ki), (hidden, hidden), jnp.float32),
                        HPAD, HPAD))
        w2s.append(pad2(0.1 * jax.random.normal(next(ki), (hidden, hidden), jnp.float32),
                        HPAD, HPAD))
    fc_w = pad2(0.1 * jax.random.normal(next(ki), (hidden, num_classes), jnp.float32),
                HPAD, CPAD)

    return {
        "num_classes": num_classes,
        "conv1_w": conv1_w,                               # [Fin, HPAD] f32 (VPU FMA operand)
        "bn_gamma": jnp.ones((1, HPAD), jnp.float32),
        "bn_beta": jnp.zeros((1, HPAD), jnp.float32),     # padded lanes must stay 0
        "res_w1": jnp.stack(w1s).astype(jnp.bfloat16),    # [nblk, HPAD, HPAD]
        "res_b1": jnp.zeros((nblk, 1, HPAD), jnp.float32),
        "res_w2": jnp.stack(w2s).astype(jnp.bfloat16),    # [nblk, HPAD, HPAD]
        "res_b2": jnp.zeros((nblk, 1, HPAD), jnp.float32),
        "fc_w": fc_w.astype(jnp.bfloat16),                # [HPAD, CPAD]
        "fc_b": jnp.zeros((1, CPAD), jnp.float32),
    }


if __name__ == "__main__":
    key = jax.random.PRNGKey(0)
    k_x, k_p = jax.random.split(key)

    num_graphs = 32
    nodes_per_graph = 16          # fixed per-graph node slab (multiple of 8)
    N = num_graphs * nodes_per_graph
    num_classes = 3

    # Node features [N, 2], already laid out graph-by-graph (slab layout).
    x = jax.random.normal(k_x, (N, 2), jnp.float32)

    # Bidirectional ring edges inside each graph -> edge_index [2, E]
    def ring_edges(n, off):
        src = jnp.arange(n) + off
        dst = (jnp.arange(n) + 1) % n + off
        return jnp.stack([jnp.concatenate([src, dst]), jnp.concatenate([dst, src])])

    ei = jnp.concatenate([ring_edges(nodes_per_graph, g * nodes_per_graph)
                          for g in range(num_graphs)], axis=1).astype(jnp.int32)

    # Precompute graph structure ONCE (hoisted out of the forward).
    adj = gcn_norm_adj(ei, N)                    # [N, N] bf16
    valid = jnp.ones((N, 1), jnp.float32)        # all node slots are real in this demo

    params = init_params(k_p, num_classes=num_classes, layer_list=(2, 2, 2, 2),
                         hidden=64, in_feats=2)

    out = resnet_forward(params, x, adj, valid, num_graphs, nodes_per_graph)
    jax.block_until_ready(out)
    assert out.shape == (num_graphs, num_classes)
    assert bool(jnp.all(jnp.isfinite(out)))
    print("KERNEL_OK")
</pallas_src>

<mosaic_0001>
module attributes {stable_mosaic.version = 11 : i64} {
  func.func @gcn_aggregate_kernel(%arg0: i32, %arg1: i32, %arg2: memref<256x2xf32, #tpu.memory_space<vmem>>, %arg3: memref<2x128xf32, #tpu.memory_space<vmem>>, %arg4: memref<256x256xbf16, #tpu.memory_space<vmem>>, %arg5: memref<256x128xf32, #tpu.memory_space<vmem>>, %arg6: memref<1x2x128xf32, #tpu.memory_space<vmem>>) attributes {dimension_semantics = [#tpu.dimension_semantics<parallel>, #tpu.dimension_semantics<arbitrary>], iteration_bounds = array<i64: 2, 2>, scalar_prefetch = 0 : i64, scratch_operands = 0 : i64, tpu.core_type = #tpu.core_type<tc>, window_params = [{transform_indices = @transform_0, window_bounds = array<i64: 256, 2>}, {pipeline_mode = #tpu.pipeline_mode<synchronous>, transform_indices = @transform_1, window_bounds = array<i64: 2, 128>}, {transform_indices = @transform_2, window_bounds = array<i64: 256, 256>}, {transform_indices = @transform_3, window_bounds = array<i64: 256, 128>}, {transform_indices = @transform_4, window_bounds = array<i64: 1, 2, 128>}]} {
    %c0_i32 = arith.constant 0 : i32
    %0 = arith.cmpi eq, %arg1, %c0_i32 : i32
    %1 = arith.extui %0 : i1 to i32
    %c0_i32_0 = arith.constant 0 : i32
    %2 = arith.cmpi ne, %1, %c0_i32_0 : i32
    scf.if %2 {
      %cst_11 = arith.constant 0.000000e+00 : f32
      %25 = vector.broadcast %cst_11 : f32 to vector<256x128xf32>
      %c0_12 = arith.constant 0 : index
      %c0_13 = arith.constant 0 : index
      %26 = vector.load %arg5[%c0_12, %c0_13] : memref<256x128xf32, #tpu.memory_space<vmem>>, vector<256x128xf32>
      tpu.vector_store %arg5[%c0_12, %c0_13], %25 {strides = array<i32>} : memref<256x128xf32, #tpu.memory_space<vmem>>, vector<256x128xf32>,
    } else {
    }
    %c0 = arith.constant 0 : index
    %c0_1 = arith.constant 0 : index
    %3 = vector.load %arg2[%c0, %c0_1] : memref<256x2xf32, #tpu.memory_space<vmem>>, vector<256x2xf32>
    %c0_2 = arith.constant 0 : index
    %c0_3 = arith.constant 0 : index
    %4 = vector.load %arg3[%c0_2, %c0_3] : memref<2x128xf32, #tpu.memory_space<vmem>>, vector<2x128xf32>
    %5 = vector.extract_strided_slice %3 {offsets = [0, 0], sizes = [256, 1], strides = [1, 1]} : vector<256x2xf32> to vector<256x1xf32>
    %6 = vector.extract_strided_slice %4 {offsets = [0, 0], sizes = [1, 128], strides = [1, 1]} : vector<2x128xf32> to vector<1x128xf32>
    %7 = vector.broadcast %5 : vector<256x1xf32> to vector<256x128xf32>
    %8 = vector.broadcast %6 : vector<1x128xf32> to vector<256x128xf32>
    %9 = arith.mulf %7, %8 : vector<256x128xf32>
    %10 = vector.extract_strided_slice %3 {offsets = [0, 1], sizes = [256, 1], strides = [1, 1]} : vector<256x2xf32> to vector<256x1xf32>
    %11 = vector.extract_strided_slice %4 {offsets = [1, 0], sizes = [1, 128], strides = [1, 1]} : vector<2x128xf32> to vector<1x128xf32>
    %12 = vector.broadcast %10 : vector<256x1xf32> to vector<256x128xf32>
    %13 = vector.broadcast %11 : vector<1x128xf32> to vector<256x128xf32>
    %14 = arith.mulf %12, %13 : vector<256x128xf32>
    %15 = arith.addf %9, %14 : vector<256x128xf32>
    %c0_4 = arith.constant 0 : index
    %c0_5 = arith.constant 0 : index
    %16 = vector.load %arg5[%c0_4, %c0_5] : memref<256x128xf32, #tpu.memory_space<vmem>>, vector<256x128xf32>
    %c0_6 = arith.constant 0 : index
    %c0_7 = arith.constant 0 : index
    %17 = vector.load %arg4[%c0_6, %c0_7] : memref<256x256xbf16, #tpu.memory_space<vmem>>, vector<256x256xbf16>
    %18 = arith.truncf %15 : vector<256x128xf32> to vector<256x128xbf16>
    %cst = arith.constant dense<0.000000e+00> : vector<256x128xf32>
    %19 = tpu.matmul %17, %18, %cst {dimension_numbers = #tpu.dot_dimension_numbers<[1], [0], [0], [1], [0, 0, 1, 1], [], []>} : vector<256x256xbf16>, vector<256x128xbf16>, vector<256x128xf32> -> vector<256x128xf32>
    %20 = arith.addf %16, %19 : vector<256x128xf32>
    %c0_8 = arith.constant 0 : index
    %c0_9 = arith.constant 0 : index
    %21 = vector.load %arg5[%c0_8, %c0_9] : memref<256x128xf32, #tpu.memory_space<vmem>>, vector<256x128xf32>
    tpu.vector_store %arg5[%c0_8, %c0_9], %20 {strides = array<i32>} : memref<256x128xf32, #tpu.memory_space<vmem>>, vector<256x128xf32>,
    %c1_i32 = arith.constant 1 : i32
    %22 = arith.cmpi eq, %arg1, %c1_i32 : i32
    %23 = arith.extui %22 : i1 to i32
    %c0_i32_10 = arith.constant 0 : i32
    %24 = arith.cmpi ne, %23, %c0_i32_10 : i32
    scf.if %24 {
      %c0_11 = arith.constant 0 : index
      %c0_12 = arith.constant 0 : index
      %25 = vector.load %arg5[%c0_11, %c0_12] : memref<256x128xf32, #tpu.memory_space<vmem>>, vector<256x128xf32>
      %cst_13 = arith.constant dense<0.000000e+00> : vector<128xf32>
      %26 = vector.multi_reduction <add>, %25, %cst_13 [0] : vector<256x128xf32> to vector<128xf32>
      %27 = vector.shape_cast %26 : vector<128xf32> to vector<1x128xf32>
      %28 = arith.mulf %25, %25 : vector<256x128xf32>
      %cst_14 = arith.constant dense<0.000000e+00> : vector<128xf32>
      %29 = vector.multi_reduction <add>, %28, %cst_14 [0] : vector<256x128xf32> to vector<128xf32>
      %30 = vector.shape_cast %29 : vector<128xf32> to vector<1x128xf32>
      %31 = tpu.concatenate %27, %30 in 0 : vector<1x128xf32>, vector<1x128xf32> -> vector<2x128xf32>
      %32 = vector.shape_cast %31 : vector<2x128xf32> to vector<1x2x128xf32>
      %c0_15 = arith.constant 0 : index
      %c0_16 = arith.constant 0 : index
      %c0_17 = arith.constant 0 : index
      %33 = vector.load %arg6[%c0_15, %c0_16, %c0_17] : memref<1x2x128xf32, #tpu.memory_space<vmem>>, vector<1x2x128xf32>
      tpu.vector_store %arg6[%c0_15, %c0_16, %c0_17], %32 {strides = array<i32>} : memref<1x2x128xf32, #tpu.memory_space<vmem>>, vector<1x2x128xf32>,
    } else {
    }
    return
  }
  func.func @transform_0(%arg0: i32, %arg1: i32) -> (i32, i32) {
    %c0_i32 = arith.constant 0 : i32
    %c0_i32_0 = arith.constant 0 : i32
    return %arg1, %c0_i32 : i32, i32
  }
  func.func @transform_1(%arg0: i32, %arg1: i32) -> (i32, i32) {
    %c0_i32 = arith.constant 0 : i32
    %c0_i32_0 = arith.constant 0 : i32
    %c0_i32_1 = arith.constant 0 : i32
    return %c0_i32, %c0_i32_0 : i32, i32
  }
  func.func @transform_2(%arg0: i32, %arg1: i32) -> (i32, i32) {
    %c0_i32 = arith.constant 0 : i32
    return %arg0, %arg1 : i32, i32
  }
  func.func @transform_3(%arg0: i32, %arg1: i32) -> (i32, i32) {
    %c0_i32 = arith.constant 0 : i32
    %c0_i32_0 = arith.constant 0 : i32
    return %arg0, %c0_i32 : i32, i32
  }
  func.func @transform_4(%arg0: i32, %arg1: i32) -> (i32, i32, i32) {
    %c0_i32 = arith.constant 0 : i32
    %c0_i32_0 = arith.constant 0 : i32
    %c0_i32_1 = arith.constant 0 : i32
    return %arg0, %c0_i32, %c0_i32_0 : i32, i32, i32
  }
}

</mosaic_0001>

<bundles_post_ra>
// kernel: tpu_custom_call.1
= control target key start
LH: loop header
LB: loop body
LE: loop exit
PB: predicated region body
PF: predicated region fallthrough
CT: control target
= control target key end

     0   :  { %10 = vsyncpa [#allocation3], 0  ;;  %s2671_s0 = inlined_call_operand.vmem [shape: f32[512,2], index: 0, kind: input, shape index: {}]   ;;  %s2672_s1 = inlined_call_operand.vmem [shape: f32[2,128], index: 1, kind: input, shape index: {}]   ;;  %s2673_s2 = inlined_call_operand.hbm [shape: bf16[512,512], index: 2, kind: input, shape index: {}]   ;;  %s2674_s3 = inlined_call_operand.hbm [shape: f32[512,128], index: 3, kind: output, shape index: {0}]   ;;  %s2675_s4 = inlined_call_operand.hbm [shape: f32[2,2,128], index: 4, kind: output, shape index: {1}]  }
   0x1   :  { %12 = vsyncpa [#allocation3 + $0x1], 0 }
   0x2   :  { %13 = vsyncpa [#allocation4], 0 }
   0x3   :  { %15 = vsyncpa [#allocation4 + $0x1], 0 }
   0x4   :  { %16 = vsyncpa [#allocation7], 0 }
   0x5   :  { %18 = vsyncpa [#allocation7 + $0x1], 0  ;;  %s2102_s15 = smov 0   ;;  %s2104_s16 = smov 0  }
   0x6   :  { %s2106_s17 = smov 0   ;;  %s2108_s18 = smov 0  }
   0x7   :  { %s2110_s19 = smov 0   ;;  %s2112_s20 = smov 0  }
   0x8   :  { %s2114_s21 = smov 0   ;;  %s2116_s22 = smov 0  }
   0x9   :  { %s2118_s23 = smov 0   ;;  %s2120_s24 = smov 0  }
   0xa   :  { %s2122_s25 = smov 0  }
   0xb LB: > { %2680 = sst [smem:[#allocation11_spill]] %s2044_s20  ;;  %s1504_s26 = sadd.s32 4294967295, %s2064_s25   ;;  %s2064_s25 = sphi %s2122_s25, %s24_s25   ;;  %s2060_s24 = sphi %s2120_s24, %s2696_s24   ;;  %s2056_s23 = sphi %s2118_s23, %s2703_s23   ;;  %s2052_s22 = sphi %s2116_s22, %s2694_s22   ;;  %s2048_s21 = sphi %s2114_s21, %s2702_s21   ;;  %s2044_s20 = sphi %s2112_s20, %s2693_s20   ;;  %s2040_s19 = sphi %s2110_s19, %s2701_s19   ;;  %s2036_s18 = sphi %s2108_s18, %s2700_s18   ;;  %s2032_s17 = sphi %s2106_s17, %s2699_s17   ;;  %s2028_s16 = sphi %s2104_s16, %s2698_s16   ;;  %s2024_s15 = sphi %s2102_s15, %s2697_s15  }
   0xc   : > { %2681 = sst [smem:[#allocation12_spill]] %s2060_s24  ;;  %s1505_s27 = sadd.s32 4294967294, %s2064_s25  }
   0xd   : > { %s33_s28 = sadd.s32 1, %s2056_s23  ;;  %s36_s29 = sadd.s32 1, %s2060_s24 }
   0xe   : > { %p34_p0 = scmp.ge.s32.totalorder %s33_s28, 2  ;;  %s92_s30 = sadd.s32 1, %s2044_s20 }
   0xf   : > { %p99_p1 = scmp.ne.s32.totalorder %s2044_s20, %s2040_s19  ;;  %p100_p2 = scmp.eq.s32.totalorder %s2064_s25, 0 }
  0x10   : > { %s2705_s28 = smov (%p34_p0, %s33_s28), 0  ;;  %s2707_s29 = smov (!%p34_p0, %s36_s29), %s2060_s24 }
  0x11   : > { %2682 = sst [smem:[#allocation13_spill]] %s2705_s28  ;;  %s88_s5 = ssub.s32 %s2056_s23, %s2705_s28 }
  0x12   : > { %p2168_p3 = por %p100_p2, %p99_p1  ;;  %p38_p4 = scmp.ge.s32.totalorder %s2707_s29, 2 }
  0x13   : > { %p105_p5 = scmp.ne.s32.totalorder %s2040_s19, %s2036_s18  ;;  %p106_p6 = scmp.eq.s32.totalorder %s1504_s26, 0 }
  0x14   : > { %s118_s7 = sadd.s32 1, %s2032_s17  ;;  %s2709_s29 = smov (%p38_p4, %s2707_s29), 0 }
  0x15   : > { %2684 = sst [smem:[#allocation14_spill]] %s2709_s29  ;;  %p2176_p7 = por %p106_p6, %p105_p5 }
  0x16   : > { %p128_p8 = scmp.ne.s32.totalorder %s2032_s17, %s2028_s16  ;;  %s87_s9 = ssub.s32 %s2060_s24, %s2709_s29 }
  0x17   : > { %p129_p9 = scmp.eq.s32.totalorder %s1504_s26, 3  ;;  %s89_s10 = sor.u32 %s88_s5, %s87_s9 }
  0x18   : > { %p116_p10 = scmp.eq.s32.totalorder %s87_s9, 0  ;;  %p90_p11 = scmp.eq.s32.totalorder %s89_s10, 0 }
  0x19   : > { %p2184_p12 = por %p129_p9, %p128_p8  ;;  %p134_p13 = scmp.ne.s32.totalorder %s2028_s16, %s2024_s15 }
  0x1a   : > { %s2189_s12 = scalar_select %p116_p10, %s2032_s17, %s118_s7  }
  0x1b   : > { %s2192_s13 = scalar_select %p90_p11, %s2044_s20, %s92_s30  }
  0x1c   : > { %2687 = sst [smem:[#allocation15_spill]] %s2189_s12  ;;  %p135_p0 = scmp.eq.s32.totalorder %s1505_s27, 3 }
  0x1d   : > { %2688 = sst [smem:[#allocation16_spill]] %s2192_s13  ;;  %p1707_p1 = scmp.lt.s32.totalorder %s2064_s25, 4 }
  0x1e   : > { %p2197_p2 = por %p135_p0, %p134_p13  ;;  %s193_s18 = sand.u32 1, %s2044_s20  }
  0x1f   : > { %s1508_s26 = sshll.u32 %s193_s18, 8  ;;  %s1510_s5 = sshll.u32 %s2056_s23, 1 }
  0x20   : > { %s1560_s9 = sshll.u32 %s2060_s24, 7  ;;  %s197_s10 = scalar_lea.vmem [#allocation2], %s1508_s26 }
  0x21   : > { %s207_s29 = sshll.u32 %s197_s10, 4  ;;  %s204_s28 = sadd.s32 %s1560_s9, %s1510_s5  ;;  %s208_s29 = int_to_ptr.vmem [resolvable:$true] %s207_s29 }
  0x22   : > { %s1512_s7 = sshll.u32 %s204_s28, 6  ;;  %p2206_p4 = pnand %p1707_p1, %p2168_p3 }
  0x23   : > { %s206_s12 = scalar_lea.hbm %s2673_s2, %s1512_s7  ;;  %p1513_p5 = scmp.ge.s32.totalorder %s2064_s25, 1 }
  0x24   : > { %s194_s20 = scalar_lea.sflag [#allocation3], %s193_s18  ;;  %p1888_p6 = pneg %p2206_p4 }
  0x25   : > { %s1899_s24 = scalar_lea.vmem %s208_s29, 4096  ;;  %s2066_s26 = smov [#allocation2]  }
  0x26   : > { %p1900_p8 = scmp.ne.s32.totalorder %s208_s29, %s1899_s24  ;;  %s1904_s28 = sshll.u32 %s2066_s26, 4  ;;  %s1905_s28 = int_to_ptr.vmem [resolvable:$false] %s1904_s28 }
  0x27   : > { %s1906_s6 = scalar_lea.vmem %s1905_s28, 8192  ;;  %p1907_p3 = scmp.lt.s32.totalorder %s208_s29, %s1905_s28 }
  0x28   : > { %p1902_p9 = pnand %p1900_p8, %p1888_p6  ;;  %p1908_p11 = scmp.lt.s32.totalorder %s1906_s6, %s1899_s24 }
  0x2a   : > { %p1903_p10 = pneg %p1902_p9  ;;  %p1909_p13 = por %p1908_p11, %p1907_p3 }
  0x2c   : > { %p1910_p0 = pnand %p1909_p13, %p1903_p10 }
  0x2e   : > { %1913 = shalt.err (!%p1910_p0)
}
  0x2f   : > { %s2067_s13 = smov 256   ;;  %s2068_s18 = smov 128  }
  0x30   : > { %s2069_s5 = smov 8   ;;  %p215_p1 = scmp.lt.s32.totalorder %s2064_s25, 5 }
  0x31   : > { %1699 = dma.hbm_to_vmem [thread:$0]  (!%p2206_p4), %s206_s12, 4096, %s208_s29, %s194_s20, %s2067_s13, %s2068_s18, %s2069_s5  }
  0x32   : > { %p216_p6 = pnand %p1513_p5, %p215_p1 }
  0x33   : > { %s221_s9 = sand.u32 (!%p216_p6), 1, %s2040_s19  }
  0x34   : > { %219 = sbr.rel (%p216_p6) target bundleno = 789 (0x315), region = 32  ;;  %s1514_s10 = sshll.u32 (!%p216_p6), %s221_s9, 8 }
  0x35   : > { %s222_s24 = scalar_lea.sflag (!%p216_p6), [#allocation3], %s221_s9  ;;  %s2222_s7 = scalar_lea.vmem (!%p216_p6), [#allocation2], %s1514_s10 }
  0x39   : > { %2011 = dma.done.wait (%p2176_p7), %s222_s24, 4096  }
  0x3a   : > { %2013 = vsyncadd (%p2176_p7), %s222_s24, 4294963200  ;;  %s2229_s30 = sand.u32 1, %s2028_s16   ;;  %s1517_s20 = sshll.u32 %s2048_s21, 5 }
  0x3b   : > { %s1515_s29 = sshll.u32 %s2229_s30, 8  ;;  %s1516_s12 = sshll.u32 %s2229_s30, 1 }
  0x3c   : > { %p261_p4 = scmp.lt.s32.totalorder %s1517_s20, 63  ;;  %s2239_s13 = scalar_lea.vmem [#allocation5], %s1515_s29 }
  0x3d   : > { %s2241_s8 = scalar_lea.vmem [#allocation6], %s1516_s12  ;;  %p1519_p7 = scmp.ne.s32.totalorder %s2048_s21, 0 }
  0x3e   : > { %s2711_s20 = smov (!%p261_p4, %s1517_s20), 63 }
  0x3f   : > { %s1518_s27 = sshll.u32 %s2711_s20, 3  ;;  %273 = sbr.rel (%p1519_p7) target bundleno = 85 (0x55), region = 40 }
  0x40   : > { %s2237_s6 = scalar_lea.vmem %s2671_s0, %s1518_s27 }
  0x44   : > { %v2070_v0 = vmov 0.0  }
  0x45   : > { %274 = vst [vmem:[%s2239_s13] sm:$0xff] %v2070_v0  ;;  %275 = vst [vmem:[%s2239_s13 + $0x8] sm:$0xff] %v2070_v0 }
  0x46   : > { %276 = vst [vmem:[%s2239_s13 + $0x10] sm:$0xff] %v2070_v0  ;;  %277 = vst [vmem:[%s2239_s13 + $0x18] sm:$0xff] %v2070_v0 }
  0x47   : > { %278 = vst [vmem:[%s2239_s13 + $0x20] sm:$0xff] %v2070_v0  ;;  %279 = vst [vmem:[%s2239_s13 + $0x28] sm:$0xff] %v2070_v0 }
  0x48   : > { %280 = vst [vmem:[%s2239_s13 + $0x30] sm:$0xff] %v2070_v0  ;;  %281 = vst [vmem:[%s2239_s13 + $0x38] sm:$0xff] %v2070_v0 }
  0x49   : > { %282 = vst [vmem:[%s2239_s13 + $0x40] sm:$0xff] %v2070_v0  ;;  %283 = vst [vmem:[%s2239_s13 + $0x48] sm:$0xff] %v2070_v0 }
  0x4a   : > { %284 = vst [vmem:[%s2239_s13 + $0x50] sm:$0xff] %v2070_v0  ;;  %285 = vst [vmem:[%s2239_s13 + $0x58] sm:$0xff] %v2070_v0 }
  0x4b   : > { %286 = vst [vmem:[%s2239_s13 + $0x60] sm:$0xff] %v2070_v0  ;;  %287 = vst [vmem:[%s2239_s13 + $0x68] sm:$0xff] %v2070_v0 }
  0x4c   : > { %288 = vst [vmem:[%s2239_s13 + $0x70] sm:$0xff] %v2070_v0  ;;  %289 = vst [vmem:[%s2239_s13 + $0x78] sm:$0xff] %v2070_v0 }
  0x4d   : > { %290 = vst [vmem:[%s2239_s13 + $0x80] sm:$0xff] %v2070_v0  ;;  %291 = vst [vmem:[%s2239_s13 + $0x88] sm:$0xff] %v2070_v0 }
  0x4e   : > { %292 = vst [vmem:[%s2239_s13 + $0x90] sm:$0xff] %v2070_v0  ;;  %293 = vst [vmem:[%s2239_s13 + $0x98] sm:$0xff] %v2070_v0 }
  0x4f   : > { %294 = vst [vmem:[%s2239_s13 + $0xa0] sm:$0xff] %v2070_v0  ;;  %295 = vst [vmem:[%s2239_s13 + $0xa8] sm:$0xff] %v2070_v0 }
  0x50   : > { %296 = vst [vmem:[%s2239_s13 + $0xb0] sm:$0xff] %v2070_v0  ;;  %297 = vst [vmem:[%s2239_s13 + $0xb8] sm:$0xff] %v2070_v0 }
  0x51   : > { %298 = vst [vmem:[%s2239_s13 + $0xc0] sm:$0xff] %v2070_v0  ;;  %299 = vst [vmem:[%s2239_s13 + $0xc8] sm:$0xff] %v2070_v0 }
  0x52   : > { %300 = vst [vmem:[%s2239_s13 + $0xd0] sm:$0xff] %v2070_v0  ;;  %301 = vst [vmem:[%s2239_s13 + $0xd8] sm:$0xff] %v2070_v0 }
  0x53   : > { %302 = vst [vmem:[%s2239_s13 + $0xe0] sm:$0xff] %v2070_v0  ;;  %303 = vst [vmem:[%s2239_s13 + $0xe8] sm:$0xff] %v2070_v0 }
  0x54   : > { %304 = vst [vmem:[%s2239_s13 + $0xf0] sm:$0xff] %v2070_v0  ;;  %305 = vst [vmem:[%s2239_s13 + $0xf8] sm:$0xff] %v2070_v0 }
  0x55 PF: > { %v336_v1 = vld [vmem:[%s2237_s6 + $0xf0] sm:$0xff]  ;;  %v2071_v2 = vmov 1   ;;  %v2072_v3 = vmov 0   ;;  %v337_v4 = vld [vmem:[%s2237_s6 + $0xf8] sm:$0xff]  ;;  %v335_v7 = vld [vmem:[%s2237_s6 + $0xe8] sm:$0xff]  ;;  %v499_v29 = vlaneseq  ;;  %p1552_p5 = scmp.ne.s32.totalorder %s2048_s21, 1 }
  0x56   : > { %1806 = vset.pattern.permute.xlu1 %v2071_v2  ;;  %1805 = vset.pattern.permute.xlu0 %v2072_v3  ;;  %v320_v5 = vld [vmem:[%s2237_s6 + $0x70] sm:$0xff]  ;;  %v321_v6 = vld [vmem:[%s2237_s6 + $0x78] sm:$0xff]  ;;  %v318_v8 = vld [vmem:[%s2237_s6 + $0x60] sm:$0xff] }
  0x57   : > { %656 = vperm.xlu1 %1806, %v336_v1   ;;  %491 = vperm.xlu0 %1805, %v336_v1   ;;  %v334_v9 = vld [vmem:[%s2237_s6 + $0xe0] sm:$0xff]  ;;  %v333_v10 = vld [vmem:[%s2237_s6 + $0xd8] sm:$0xff]  ;;  %v316_v11 = vld [vmem:[%s2237_s6 + $0x50] sm:$0xff]  ;;  %v500_v31 = vshrl.u32 %v499_v29, 7 }
  0x58   : > { %v331_v12 = vld [vmem:[%s2237_s6 + $0xc8] sm:$0xff]  ;;  %v314_v13 = vld [vmem:[%s2237_s6 + $0x40] sm:$0xff]  ;;  %v329_v15 = vld [vmem:[%s2237_s6 + $0xb8] sm:$0xff] }
  0x59   : > { %v319_v14 = vld [vmem:[%s2237_s6 + $0x68] sm:$0xff]  ;;  %v312_v16 = vld [vmem:[%s2237_s6 + $0x30] sm:$0xff]  ;;  %v310_v19 = vld [vmem:[%s2237_s6 + $0x20] sm:$0xff]  ;;  %v665_v32 = vsub.s32 1, %v500_v31  ;;  %v501_v33 = vsub.s32 0, %v500_v31 }
  0x5a   : > { %v332_v17 = vld [vmem:[%s2237_s6 + $0xd0] sm:$0xff]  ;;  %v2300_v18 = vld [vmem:[%s2237_s6 + $0xa8] sm:$0xff]  ;;  %v2307_v20 = vld [vmem:[%s2237_s6 + $0x98] sm:$0xff] }
  0x5b   : > { %660 = vperm.xlu1 %1806, %v337_v4   ;;  %496 = vperm.xlu0 %1805, %v337_v4   ;;  %v308_v21 = vld [vmem:[%s2237_s6 + $0x10] sm:$0xff]  ;;  %v317_v22 = vld [vmem:[%s2237_s6 + $0x58] sm:$0xff]  ;;  %v2314_v23 = vld [vmem:[%s2237_s6 + $0x88] sm:$0xff] }
  0x5c   : > { %v306_v24 = vld [vmem:[%s2237_s6] sm:$0xff]  ;;  %v315_v26 = vld [vmem:[%s2237_s6 + $0x48] sm:$0xff]  ;;  %v328_v27 = vld [vmem:[%s2237_s6 + $0xb0] sm:$0xff] }
  0x5d   : > { %v330_v25 = vld [vmem:[%s2237_s6 + $0xc0] sm:$0xff]  ;;  %v313_v28 = vld [vmem:[%s2237_s6 + $0x38] sm:$0xff]  ;;  %v311_v41 = vld [vmem:[%s2237_s6 + $0x28] sm:$0xff] }
  0x5e   : > { %v326_v30 = vld [vmem:[%s2237_s6 + $0xa0] sm:$0xff]  ;;  %v324_v53 = vld [vmem:[%s2237_s6 + $0x90] sm:$0xff]  ;;  %v309_v61 = vld [vmem:[%s2237_s6 + $0x18] sm:$0xff] }
  0x5f   : > { %1807 = vset.pattern.permute.xlu1 %v2072_v3  ;;  %411 = vperm.xlu0 %1805, %v320_v5   ;;  %v338_v34 = vld [vmem:[%s2672_s1] sm:$0x3] }
  0x60   : > { %416 = vperm.xlu1 %1807, %v321_v6   ;;  %v2338_v35 = vrot.slane %v338_v34, %v665_v32  ;;  %v2340_v36 = vrot.slane %v338_v34, %v501_v33  ;;  %v322_v4 = vld [vmem:[%s2237_s6 + $0x80] sm:$0xff] }
  0x63   : > { %486 = vperm.xlu0 %1805, %v335_v7  }
  0x64   : > { %1808 = vset.pattern.permute.xlu1 %v2071_v2 }
  0x65   : > { %596 = vperm.xlu1 %1808, %v321_v6  }
  0x67   : > { %401 = vperm.xlu0 %1805, %v318_v8  }
  0x69   : > { %1809 = vset.pattern.permute.xlu1 %v2072_v3 }
  0x6a   : > { %481 = vperm.xlu1 %1809, %v334_v9  }
  0x6b   : > { %476 = vperm.xlu0 %1805, %v333_v10  }
  0x6e   : > { %1810 = vset.pattern.permute.xlu1 %v2071_v2 }
  0x6f   : > { %648 = vperm.xlu1 %1810, %v334_v9   ;;  %391 = vperm.xlu0 %1805, %v316_v11  }
  0x73   : > { %652 = vperm.xlu1 %1810, %v335_v7   ;;  %466 = vperm.xlu0 %1805, %v331_v12  }
  0x77   : > { %1811 = vset.pattern.permute.xlu1 %v2072_v3  ;;  %381 = vperm.xlu0 %1805, %v314_v13  }
  0x78   : > { %406 = vperm.xlu1 %1811, %v319_v14  }
  0x7b   : > { %456 = vperm.xlu0 %1805, %v329_v15  }
  0x7c   : > { %1812 = vset.pattern.permute.xlu1 %v2071_v2 }
  0x7d   : > { %588 = vperm.xlu1 %1812, %v319_v14  }
  0x7f   : > { %371 = vperm.xlu0 %1805, %v312_v16  }
  0x81   : > { %1813 = vset.pattern.permute.xlu1 %v2072_v3 }
  0x82   : > { %471 = vperm.xlu1 %1813, %v332_v17  }
  0x83   : > { %446 = vperm.xlu0 %1805, %v2300_v18  }
  0x86   : > { %1814 = vset.pattern.permute.xlu1 %v2071_v2 }
  0x87   : > { %640 = vperm.xlu1 %1814, %v332_v17   ;;  %361 = vperm.xlu0 %1805, %v310_v19   ;;  %v1840_v17 = vld [vmem:[%s2222_s7 + $0x4] ss:$8 sps:$4 sm:$0xff]  }
  0x88   : > { %1003 = vmatprep.mubr.bf16.mxu0 %v1840_v17 }
  0x8b   : > { %644 = vperm.xlu1 %1814, %v333_v10   ;;  %436 = vperm.xlu0 %1805, %v2307_v20  }
  0x8f   : > { %1815 = vset.pattern.permute.xlu1 %v2072_v3  ;;  %351 = vperm.xlu0 %1805, %v308_v21  }
  0x90   : > { %396 = vperm.xlu1 %1815, %v317_v22  }
  0x93   : > { %426 = vperm.xlu0 %1805, %v2314_v23  }
  0x94   : > { %1816 = vset.pattern.permute.xlu1 %v2071_v2 }
  0x95   : > { %580 = vperm.xlu1 %1816, %v317_v22  }
  0x97   : > { %341 = vperm.xlu0 %1805, %v306_v24  }
  0x99   : > { %1817 = vset.pattern.permute.xlu1 %v2072_v3 }
  0x9a   : > { %461 = vperm.xlu1 %1817, %v330_v25  }
  0x9b   : > { %1835 = vset.pattern.permute.xlu0 %v2071_v2 }
  0x9c   : > { %592 = vperm.xlu0 %1835, %v320_v5  }
  0x9e   : > { %1818 = vset.pattern.permute.xlu1 %v2071_v2 }
  0x9f   : > { %632 = vperm.xlu1 %1818, %v330_v25  }
  0xa0   : > { %584 = vperm.xlu0 %1835, %v318_v8  }
  0xa3   : > { %636 = vperm.xlu1 %1818, %v331_v12   ;;  %v307_v12 = vld [vmem:[%s2237_s6 + $0x8] sm:$0xff] }
  0xa4   : > { %576 = vperm.xlu0 %1835, %v316_v11  }
  0xa7   : > { %1819 = vset.pattern.permute.xlu1 %v2072_v3 }
  0xa8   : > { %386 = vperm.xlu1 %1819, %v315_v26   ;;  %568 = vperm.xlu0 %1835, %v314_v13  }
  0xac   : > { %1820 = vset.pattern.permute.xlu1 %v2071_v2  ;;  %560 = vperm.xlu0 %1835, %v312_v16  }
  0xad   : > { %572 = vperm.xlu1 %1820, %v315_v26  }
  0xb0   : > { %552 = vperm.xlu0 %1835, %v310_v19  }
  0xb1   : > { %1821 = vset.pattern.permute.xlu1 %v2072_v3 }
  0xb2   : > { %451 = vperm.xlu1 %1821, %v328_v27  }
  0xb4   : > { %544 = vperm.xlu0 %1835, %v308_v21  }
  0xb6   : > { %1822 = vset.pattern.permute.xlu1 %v2071_v2 }
  0xb7   : > { %624 = vperm.xlu1 %1822, %v328_v27  }
  0xb8   : > { %536 = vperm.xlu0 %1835, %v306_v24  }
  0xbb   : > { %628 = vperm.xlu1 %1822, %v329_v15  }
  0xbf   : > { %1823 = vset.pattern.permute.xlu1 %v2072_v3 }
  0xc0   : > { %376 = vperm.xlu1 %1823, %v313_v28  }
  0xc4   : > { %1824 = vset.pattern.permute.xlu1 %v2071_v2 }
  0xc5   : > { %564 = vperm.xlu1 %1824, %v313_v28  }
  0xc9   : > { %1825 = vset.pattern.permute.xlu1 %v2072_v3 }
  0xca   : > { %441 = vperm.xlu1 %1825, %v326_v30  }
  0xce   : > { %1826 = vset.pattern.permute.xlu1 %v2071_v2 }
  0xcf   : > { %616 = vperm.xlu1 %1826, %v326_v30  }
  0xd2   : > { %v657_v37 = vpop.permute.xlu1 %656  ;;  %v492_v38 = vpop.permute.xlu0 %491 }
  0xd3   : > { %620 = vperm.xlu1 %1826, %v2300_v18   ;;  %v697_v39 = vmul.f32 %v2338_v35, %v657_v37  ;;  %v533_v40 = vmul.f32 %v2340_v36, %v492_v38  ;;  %v1843_v18 = vld [vmem:[%s2222_s7 + $0x84] ss:$8 sps:$4 sm:$0xff]  }
  0xd4   : > { %1067 = vmatprep.mubr.bf16.mxu1 %v1843_v18 }
  0xd5   : > { %v729_v46 = vadd.f32 %v697_v39, %v533_v40 }
  0xd6   : > { %v661_v42 = vpop.permute.xlu1 %660  ;;  %v497_v43 = vpop.permute.xlu0 %496 }
  0xd7   : > { %v698_v44 = vmul.f32 %v2338_v35, %v661_v42  ;;  %v534_v45 = vmul.f32 %v2340_v36, %v497_v43  ;;  %1827 = vset.pattern.permute.xlu1 %v2072_v3 }
  0xd8   : > { %366 = vperm.xlu1 %1827, %v311_v41  }
  0xd9   : > { %v730_v47 = vadd.f32 %v698_v44, %v534_v45 }
  0xda   : > { %v412_v48 = vpop.permute.xlu0 %411 }
  0xdb   : > { %v2349_v49 = vpop.permute.xlu1 %416  ;;  %v810_v50 = vpack.c.bf16 %v730_v47, %v729_v46  ;;  %v517_v22 = vmul.f32 %v2340_v36, %v412_v48 }
  0xdc   : > { %1828 = vset.pattern.permute.xlu1 %v2071_v2  ;;  %v518_v25 = vmul.f32 %v2340_v36, %v2349_v49 }
  0xdd   : > { %1562 = vmatprep.subr.bf16.mxu0 %v810_v50  ;;  %1674 = vmatprep.subr.bf16.mxu1 %v810_v50 }
  0xde   : > { %556 = vperm.xlu1 %1828, %v311_v41   ;;  %v487_v51 = vpop.permute.xlu0 %486 }
  0xe0   : > { %v597_v52 = vpop.permute.xlu1 %596 }
  0xe2   : > { %1829 = vset.pattern.permute.xlu1 %v2072_v3  ;;  %v402_v54 = vpop.permute.xlu0 %401 }
  0xe3   : > { %431 = vperm.xlu1 %1829, %v324_v53   ;;  %v515_v32 = vmul.f32 %v2340_v36, %v402_v54 }
  0xe5   : > { %v482_v55 = vpop.permute.xlu1 %481 }
  0xe6   : > { %v477_v56 = vpop.permute.xlu0 %476  ;;  %v531_v27 = vmul.f32 %v2340_v36, %v482_v55 }
  0xe7   : > { %1830 = vset.pattern.permute.xlu1 %v2071_v2  ;;  %v530_v28 = vmul.f32 %v2340_v36, %v477_v56 }
  0xe8   : > { %608 = vperm.xlu1 %1830, %v324_v53  }
  0xea   : > { %v649_v57 = vpop.permute.xlu1 %648  ;;  %v392_v58 = vpop.permute.xlu0 %391 }
  0xeb   : > { %v513_v41 = vmul.f32 %v2340_v36, %v392_v58 }
  0xec   : > { %612 = vperm.xlu1 %1830, %v2307_v20   ;;  %v532_v20 = vmul.f32 %v2340_v36, %v487_v51 }
  0xee   : > { %v653_v59 = vpop.permute.xlu1 %652  ;;  %v467_v60 = vpop.permute.xlu0 %466 }
  0xef   : > { %v528_v45 = vmul.f32 %v2340_v36, %v467_v60 }
  0xf0   : > { %1831 = vset.pattern.permute.xlu1 %v2072_v3 }
  0xf1   : > { %356 = vperm.xlu1 %1831, %v309_v61  }
  0xf2   : > { %v2358_v62 = vpop.permute.xlu0 %381 }
  0xf3   : > { %v407_v63 = vpop.permute.xlu1 %406 }
  0xf4   : > { %v516_v42 = vmul.f32 %v2340_v36, %v407_v63 }
  0xf5   : > { %1832 = vset.pattern.permute.xlu1 %v2071_v2 }
  0xf6   : > { %548 = vperm.xlu1 %1832, %v309_v61   ;;  %v2361_v0 = vpop.permute.xlu0 %456 }
  0xf8   : > { %v589_v1 = vpop.permute.xlu1 %588 }
  0xf9   : > { %v680_v33 = vmul.f32 %v2338_v35, %v589_v1 }
  0xfa   : > { %1833 = vset.pattern.permute.xlu1 %v2072_v3  ;;  %v2365_v5 = vpop.permute.xlu0 %371 }
  0xfb   : > { %421 = vperm.xlu1 %1833, %v322_v4   ;;  %v712_v49 = vadd.f32 %v680_v33, %v516_v42 }
  0xfd   : > { %v472_v6 = vpop.permute.xlu1 %471 }
  0xfe   : > { %v2367_v7 = vpop.permute.xlu0 %446  ;;  %v529_v46 = vmul.f32 %v2340_v36, %v472_v6 }
  0xff   : > { %1834 = vset.pattern.permute.xlu1 %v2071_v2 }
 0x100   : > { %600 = vperm.xlu1 %1834, %v322_v4  }
 0x102   : > { %v641_v8 = vpop.permute.xlu1 %640  ;;  %v2370_v9 = vpop.permute.xlu0 %361 }
 0x103   : > { %v693_v39 = vmul.f32 %v2338_v35, %v641_v8 }
 0x104   : > { %604 = vperm.xlu1 %1834, %v2314_v23   ;;  %v682_v23 = vmul.f32 %v2338_v35, %v597_v52 }
 0x105   : > { %v725_v53 = vadd.f32 %v693_v39, %v529_v46 }
 0x106   : > { %v645_v10 = vpop.permute.xlu1 %644  ;;  %v2373_v11 = vpop.permute.xlu0 %436  ;;  %v714_v31 = vadd.f32 %v682_v23, %v518_v25 }
 0x107   : > { %v694_v30 = vmul.f32 %v2338_v35, %v645_v10 }
 0x108   : > { %1836 = vset.pattern.permute.xlu1 %v2072_v3  ;;  %v696_v3 = vmul.f32 %v2338_v35, %v653_v59 }
 0x109   : > { %346 = vperm.xlu1 %1836, %v307_v12   ;;  %v726_v47 = vadd.f32 %v694_v30, %v530_v28 }
 0x10a   : > { %v2377_v13 = vpop.permute.xlu0 %351  ;;  %v728_v29 = vadd.f32 %v696_v3, %v532_v20 }
 0x10b   : > { %v397_v14 = vpop.permute.xlu1 %396  ;;  %v808_v63 = vpack.c.bf16 %v726_v47, %v725_v53 }
 0x10d   : > { %1837 = vset.pattern.permute.xlu1 %v2071_v2  ;;  %v695_v2 = vmul.f32 %v2338_v35, %v649_v57  ;;  %v514_v57 = vmul.f32 %v2340_v36, %v397_v14  ;;  %v511_v14 = vmul.f32 %v2340_v36, %v2358_v62 }
 0x10e   : > { %540 = vperm.xlu1 %1837, %v307_v12   ;;  %v2380_v15 = vpop.permute.xlu0 %426 }
 0x10f   : > { %v727_v38 = vadd.f32 %v695_v2, %v531_v27 }
 0x110   : > { %v581_v16 = vpop.permute.xlu1 %580 }
 0x111   : > { %v809_v48 = vpack.c.bf16 %v728_v29, %v727_v38  ;;  %v678_v50 = vmul.f32 %v2338_v35, %v581_v16 }
 0x112   : > { %v2384_v19 = vpop.permute.xlu0 %341 }
 0x113   : > { %v710_v1 = vadd.f32 %v678_v50, %v514_v57 }
 0x115   : > { %v462_v21 = vpop.permute.xlu1 %461 }
 0x116   : > { %v527_v60 = vmul.f32 %v2340_v36, %v462_v21 }
 0x117   : > { %v593_v24 = vpop.permute.xlu0 %592 }
 0x118   : > { %v681_v26 = vmul.f32 %v2338_v35, %v593_v24 }
 0x11a   : > { %v713_v34 = vadd.f32 %v681_v26, %v517_v22  ;;  %v633_v37 = vpop.permute.xlu1 %632  ;;  %v526_v26 = vmul.f32 %v2340_v36, %v2361_v0 }
 0x11b   : > { %v585_v40 = vpop.permute.xlu0 %584  ;;  %v691_v54 = vmul.f32 %v2338_v35, %v633_v37 }
 0x11c   : > { %v679_v43 = vmul.f32 %v2338_v35, %v585_v40  ;;  %v802_v44 = vpack.c.bf16 %v714_v31, %v713_v34  ;;  %v509_v34 = vmul.f32 %v2340_v36, %v2365_v5  ;;  %v524_v5 = vmul.f32 %v2340_v36, %v2367_v7 }
 0x11d   : > { %v723_v6 = vadd.f32 %v691_v54, %v527_v60 }
 0x11e   : > { %v711_v51 = vadd.f32 %v679_v43, %v515_v32  ;;  %v637_v52 = vpop.permute.xlu1 %636  ;;  %1563 = vmatpush3.bf16.msra.mxu0 %v802_v44  ;;  %1682 = vmatpush3.bf16.msra.mxu1 %v802_v44 }
 0x11f   : > { %v692_v55 = vmul.f32 %v2338_v35, %v637_v52  ;;  %1564 = vmatprep.subr.bf16.mxu0 %v809_v48  ;;  %1675 = vmatprep.subr.bf16.mxu1 %v809_v48  ;;  %v577_v56 = vpop.permute.xlu0 %576 }
 0x120   : > { %v677_v58 = vmul.f32 %v2338_v35, %v577_v56  ;;  %v801_v59 = vpack.c.bf16 %v712_v49, %v711_v51  ;;  %v507_v56 = vmul.f32 %v2340_v36, %v2370_v9 }
 0x121   : > { %v724_v61 = vadd.f32 %v692_v55, %v528_v45 }
 0x122   : > { %v709_v4 = vadd.f32 %v677_v58, %v513_v41  ;;  %1565 = vmatpush3.bf16.msra.mxu0 %v801_v59  ;;  %1683 = vmatpush3.bf16.msra.mxu1 %v801_v59 }
 0x123   : > { %v387_v8 = vpop.permute.xlu1 %386  ;;  %1566 = vmatprep.subr.bf16.mxu0 %v808_v63  ;;  %1676 = vmatprep.subr.bf16.mxu1 %v808_v63  ;;  %v569_v10 = vpop.permute.xlu0 %568  ;;  %v807_v17 = vpack.c.bf16 %v724_v61, %v723_v6  ;;  %v522_v6 = vmul.f32 %v2340_v36, %v2373_v11 }
 0x124   : > { %v800_v12 = vpack.c.bf16 %v710_v1, %v709_v4  ;;  %v675_v16 = vmul.f32 %v2338_v35, %v569_v10  ;;  %v512_v20 = vmul.f32 %v2340_v36, %v387_v8 }
 0x126   : > { %1567 = vmatpush3.bf16.msra.mxu0 %v800_v12  ;;  %1684 = vmatpush3.bf16.msra.mxu1 %v800_v12  ;;  %v707_v3 = vadd.f32 %v675_v16, %v511_v14 }
 0x127   : > { %1568 = vmatprep.subr.bf16.mxu0 %v807_v17  ;;  %1677 = vmatprep.subr.bf16.mxu1 %v807_v17  ;;  %v561_v33 = vpop.permute.xlu0 %560 }
 0x128   : > { %v573_v18 = vpop.permute.xlu1 %572  ;;  %v673_v37 = vmul.f32 %v2338_v35, %v561_v33 }
 0x129   : > { %v676_v21 = vmul.f32 %v2338_v35, %v573_v18 }
 0x12a   : > { %v705_v40 = vadd.f32 %v673_v37, %v509_v34 }
 0x12b   : > { %v708_v22 = vadd.f32 %v676_v21, %v512_v20  ;;  %v553_v53 = vpop.permute.xlu0 %552 }
 0x12c   : > { %v671_v54 = vmul.f32 %v2338_v35, %v553_v53  ;;  %v1864_v53 = vld [vmem:[%s2222_s7 + $0xc4] ss:$8 sps:$4 sm:$0xff]  }
 0x12d   : > { %v452_v23 = vpop.permute.xlu1 %451  ;;  %v799_v2 = vpack.c.bf16 %v708_v22, %v707_v3  ;;  %v505_v3 = vmul.f32 %v2340_v36, %v2377_v13 }
 0x12e   : > { %v525_v27 = vmul.f32 %v2340_v36, %v452_v23  ;;  %v703_v58 = vadd.f32 %v671_v54, %v507_v56  ;;  %v1866_v54 = vld [vmem:[%s2222_s7 + $0x40] ss:$8 sps:$4 sm:$0xff]   ;;  %v1868_v56 = vld [vmem:[%s2222_s7 + $0x54] ss:$8 sps:$4 sm:$0xff]  }
 0x12f   : > { %1569 = vmatpush3.bf16.msra.mxu0 %v799_v2  ;;  %1685 = vmatpush3.bf16.msra.mxu1 %v799_v2  ;;  %v545_v17 = vpop.permute.xlu0 %544 }
 0x130   : > { %v669_v18 = vmul.f32 %v2338_v35, %v545_v17 }
 0x132   : > { %v625_v24 = vpop.permute.xlu1 %624  ;;  %v701_v22 = vadd.f32 %v669_v18, %v505_v3 }
 0x133   : > { %v689_v62 = vmul.f32 %v2338_v35, %v625_v24  ;;  %v537_v33 = vpop.permute.xlu0 %536 }
 0x134   : > { %v667_v34 = vmul.f32 %v2338_v35, %v537_v33 }
 0x135   : > { %v721_v29 = vadd.f32 %v689_v62, %v525_v27  ;;  %v520_v27 = vmul.f32 %v2340_v36, %v2380_v15  ;;  %v503_v15 = vmul.f32 %v2340_v36, %v2384_v19  ;;  %v1846_v19 = vld [vmem:[%s2222_s7 + $0x94] ss:$8 sps:$4 sm:$0xff]  }
 0x136   : > { %v629_v25 = vpop.permute.xlu1 %628 }
 0x137   : > { %v690_v28 = vmul.f32 %v2338_v35, %v629_v25 }
 0x139   : > { %v722_v30 = vadd.f32 %v690_v28, %v526_v26 }
 0x13b   : > { %v377_v31 = vpop.permute.xlu1 %376  ;;  %v806_v32 = vpack.c.bf16 %v722_v30, %v721_v29 }
 0x13c   : > { %v510_v39 = vmul.f32 %v2340_v36, %v377_v31 }
 0x13d   : > { %1570 = vmatprep.subr.bf16.mxu0 %v806_v32  ;;  %1678 = vmatprep.subr.bf16.mxu1 %v806_v32 }
 0x140   : > { %v565_v38 = vpop.permute.xlu1 %564 }
 0x141   : > { %v674_v0 = vmul.f32 %v2338_v35, %v565_v38 }
 0x143   : > { %v706_v41 = vadd.f32 %v674_v0, %v510_v39  ;;  %v699_v0 = vadd.f32 %v667_v34, %v503_v15 }
 0x145   : > { %v442_v42 = vpop.permute.xlu1 %441  ;;  %v798_v43 = vpack.c.bf16 %v706_v41, %v705_v40 }
 0x146   : > { %v523_v47 = vmul.f32 %v2340_v36, %v442_v42  ;;  %v1838_v42 = vld [vmem:[%s2222_s7] ss:$8 sps:$4 sm:$0xff]  }
 0x147   : > { %1571 = vmatpush3.bf16.msra.mxu0 %v798_v43  ;;  %1686 = vmatpush3.bf16.msra.mxu1 %v798_v43  ;;  %v1841_v43 = vld [vmem:[%s2222_s7 + $0x80] ss:$8 sps:$4 sm:$0xff]  }
 0x14a   : > { %v617_v44 = vpop.permute.xlu1 %616 }
 0x14b   : > { %v687_v45 = vmul.f32 %v2338_v35, %v617_v44  ;;  %v1844_v44 = vld [vmem:[%s2222_s7 + $0x14] ss:$8 sps:$4 sm:$0xff]  }
 0x14d   : > { %v719_v49 = vadd.f32 %v687_v45, %v523_v47  ;;  %v1850_v45 = vld [vmem:[%s2222_s7 + $0x24] ss:$8 sps:$4 sm:$0xff]   ;;  %v1855_v47 = vld [vmem:[%s2222_s7 + $0xa0] ss:$8 sps:$4 sm:$0xff]  }
 0x14e   : > { %v621_v46 = vpop.permute.xlu1 %620 }
 0x14f   : > { %v688_v48 = vmul.f32 %v2338_v35, %v621_v46  ;;  %v1852_v46 = vld [vmem:[%s2222_s7 + $0xa4] ss:$8 sps:$4 sm:$0xff]  }
 0x151   : > { %v720_v50 = vadd.f32 %v688_v48, %v524_v5  ;;  %v1854_v5 = vld [vmem:[%s2222_s7 + $0x20] ss:$8 sps:$4 sm:$0xff]   ;;  %v1856_v48 = vld [vmem:[%s2222_s7 + $0x34] ss:$8 sps:$4 sm:$0xff]  }
 0x153   : > { %v367_v51 = vpop.permute.xlu1 %366  ;;  %v805_v52 = vpack.c.bf16 %v720_v50, %v719_v49  ;;  %v1858_v49 = vld [vmem:[%s2222_s7 + $0xb4] ss:$8 sps:$4 sm:$0xff]   ;;  %v1860_v50 = vld [vmem:[%s2222_s7 + $0x30] ss:$8 sps:$4 sm:$0xff]  }
 0x154   : > { %v508_v57 = vmul.f32 %v2340_v36, %v367_v51  ;;  %v1861_v51 = vld [vmem:[%s2222_s7 + $0xb0] ss:$8 sps:$4 sm:$0xff]  }
 0x155   : > { %1572 = vmatprep.subr.bf16.mxu0 %v805_v52  ;;  %1679 = vmatprep.subr.bf16.mxu1 %v805_v52  ;;  %v1862_v52 = vld [vmem:[%s2222_s7 + $0x44] ss:$8 sps:$4 sm:$0xff]  }
 0x159   : > { %v557_v55 = vpop.permute.xlu1 %556 }
 0x15a   : > { %v672_v7 = vmul.f32 %v2338_v35, %v557_v55  ;;  %v1867_v55 = vld [vmem:[%s2222_s7 + $0xc0] ss:$8 sps:$4 sm:$0xff]  }
 0x15c   : > { %v704_v59 = vadd.f32 %v672_v7, %v508_v57  ;;  %v1870_v57 = vld [vmem:[%s2222_s7 + $0xd4] ss:$8 sps:$4 sm:$0xff]   ;;  %v1872_v7 = vld [vmem:[%s2222_s7 + $0x50] ss:$8 sps:$4 sm:$0xff]  }
 0x15e   : > { %v432_v60 = vpop.permute.xlu1 %431  ;;  %v797_v61 = vpack.c.bf16 %v704_v59, %v703_v58  ;;  %v1873_v58 = vld [vmem:[%s2222_s7 + $0xd0] ss:$8 sps:$4 sm:$0xff]   ;;  %v1874_v59 = vld [vmem:[%s2222_s7 + $0x64] ss:$8 sps:$4 sm:$0xff]  }
 0x15f   : > { %v521_v8 = vmul.f32 %v2340_v36, %v432_v60  ;;  %v1876_v60 = vld [vmem:[%s2222_s7 + $0xe4] ss:$8 sps:$4 sm:$0xff]  }
 0x160   : > { %1573 = vmatpush3.bf16.msra.mxu0 %v797_v61  ;;  %1687 = vmatpush3.bf16.msra.mxu1 %v797_v61  ;;  %v1878_v61 = vld [vmem:[%s2222_s7 + $0x60] ss:$8 sps:$4 sm:$0xff]  }
 0x163   : > { %v609_v63 = vpop.permute.xlu1 %608 }
 0x164   : > { %v685_v1 = vmul.f32 %v2338_v35, %v609_v63  ;;  %v1879_v63 = vld [vmem:[%s2222_s7 + $0xe0] ss:$8 sps:$4 sm:$0xff]  }
 0x166   : > { %v717_v10 = vadd.f32 %v685_v1, %v521_v8  ;;  %v1880_v1 = vld [vmem:[%s2222_s7 + $0x74] ss:$8 sps:$4 sm:$0xff]   ;;  %v1885_v8 = vld [vmem:[%s2222_s7 + $0xf0] ss:$8 sps:$4 sm:$0xff]  }
 0x167   : > { %v613_v4 = vpop.permute.xlu1 %612 }
 0x168   : > { %v686_v9 = vmul.f32 %v2338_v35, %v613_v4  ;;  %v1882_v4 = vld [vmem:[%s2222_s7 + $0xf4] ss:$8 sps:$4 sm:$0xff]  }
 0x16a   : > { %v718_v12 = vadd.f32 %v686_v9, %v522_v6  ;;  %v1884_v6 = vld [vmem:[%s2222_s7 + $0x70] ss:$8 sps:$4 sm:$0xff]  }
 0x16c   : > { %v357_v14 = vpop.permute.xlu1 %356  ;;  %v804_v16 = vpack.c.bf16 %v718_v12, %v717_v10  ;;  %v731_v12 = vld [vmem:[%s2239_s13] sm:$0xff] }
 0x16d   : > { %v506_v21 = vmul.f32 %v2340_v36, %v357_v14 }
 0x16e   : > { %1574 = vmatprep.subr.bf16.mxu0 %v804_v16  ;;  %1680 = vmatprep.subr.bf16.mxu1 %v804_v16  ;;  %v747_v16 = vld [vmem:[%s2239_s13 + $0x80] sm:$0xff] }
 0x171   : > { %v549_v20 = vpop.permute.xlu1 %548 }
 0x172   : > { %v670_v11 = vmul.f32 %v2338_v35, %v549_v20 }
 0x174   : > { %v702_v23 = vadd.f32 %v670_v11, %v506_v21 }
 0x176   : > { %v422_v2 = vpop.permute.xlu1 %421  ;;  %v796_v24 = vpack.c.bf16 %v702_v23, %v701_v22  ;;  %v732_v23 = vld [vmem:[%s2239_s13 + $0x8] sm:$0xff] }
 0x177   : > { %v519_v28 = vmul.f32 %v2340_v36, %v422_v2 }
 0x178   : > { %1575 = vmatpush3.bf16.msra.mxu0 %v796_v24  ;;  %1688 = vmatpush3.bf16.msra.mxu1 %v796_v24  ;;  %v748_v24 = vld [vmem:[%s2239_s13 + $0x88] sm:$0xff] }
 0x17b   : > { %v601_v62 = vpop.permute.xlu1 %600 }
 0x17c   : > { %v683_v25 = vmul.f32 %v2338_v35, %v601_v62 }
 0x17e   : > { %v715_v29 = vadd.f32 %v683_v25, %v519_v28 }
 0x17f   : > { %v605_v26 = vpop.permute.xlu1 %604 }
 0x180   : > { %v684_v13 = vmul.f32 %v2338_v35, %v605_v26 }
 0x182   : > { %v716_v30 = vadd.f32 %v684_v13, %v520_v27 }
 0x184   : > { %v347_v31 = vpop.permute.xlu1 %346  ;;  %v803_v32 = vpack.c.bf16 %v716_v30, %v715_v29  ;;  %v733_v30 = vld [vmem:[%s2239_s13 + $0x10] sm:$0xff] }
 0x185   : > { %v504_v38 = vmul.f32 %v2340_v36, %v347_v31  ;;  %v1849_v36 = vld [vmem:[%s2222_s7 + $0x90] ss:$8 sps:$4 sm:$0xff]  }
 0x186   : > { %1576 = vmatprep.subr.bf16.mxu0 %v803_v32  ;;  %1681 = vmatprep.subr.bf16.mxu1 %v803_v32  ;;  %v749_v32 = vld [vmem:[%s2239_s13 + $0x90] sm:$0xff] }
 0x189   : > { %v541_v37 = vpop.permute.xlu1 %540 }
 0x18a   : > { %v668_v39 = vmul.f32 %v2338_v35, %v541_v37  ;;  %v1848_v35 = vld [vmem:[%s2222_s7 + $0x10] ss:$8 sps:$4 sm:$0xff]  }
 0x18c   : > { %v700_v40 = vadd.f32 %v668_v39, %v504_v38 }
 0x18e   : > { %v795_v41 = vpack.c.bf16 %v700_v40, %v699_v0  ;;  %v734_v40 = vld [vmem:[%s2239_s13 + $0x18] sm:$0xff] }
 0x190   : > { %1577 = vmatpush3.bf16.msra.mxu0 %v795_v41  ;;  %1689 = vmatpush3.bf16.msra.mxu1 %v795_v41 }
 0x193   : > { %1004 = vmatmul.mubr.bf16.vlgmr.msra.gmra.mxu0 %v1838_v42  ;;  %1068 = vmatmul.mubr.bf16.vlgmr.msra.gmra.mxu1 %v1841_v43  ;;  %v750_v42 = vld [vmem:[%s2239_s13 + $0x98] sm:$0xff] }
 0x194   : > { %1011 = vmatprep.mubr.bf16.mxu0 %v1844_v44  ;;  %1075 = vmatprep.mubr.bf16.mxu1 %v1846_v19 }
 0x19b   : > { %1012 = vmatmul.mubr.bf16.gmra.mxu0 %v1848_v35  ;;  %1076 = vmatmul.mubr.bf16.gmra.mxu1 %v1849_v36 }
 0x19c   : > { %1019 = vmatprep.mubr.bf16.mxu0 %v1850_v45  ;;  %1083 = vmatprep.mubr.bf16.mxu1 %v1852_v46 }
 0x1a3   : > { %1020 = vmatmul.mubr.bf16.gmra.mxu0 %v1854_v5  ;;  %1084 = vmatmul.mubr.bf16.gmra.mxu1 %v1855_v47  ;;  %v735_v5 = vld [vmem:[%s2239_s13 + $0x20] sm:$0xff] }
 0x1a4   : > { %1027 = vmatprep.mubr.bf16.mxu0 %v1856_v48  ;;  %1091 = vmatprep.mubr.bf16.mxu1 %v1858_v49  ;;  %v751_v48 = vld [vmem:[%s2239_s13 + $0xa0] sm:$0xff] }
 0x1ab   : > { %1028 = vmatmul.mubr.bf16.gmra.mxu0 %v1860_v50  ;;  %1092 = vmatmul.mubr.bf16.gmra.mxu1 %v1861_v51 }
 0x1ac   : > { %1035 = vmatprep.mubr.bf16.mxu0 %v1862_v52  ;;  %1099 = vmatprep.mubr.bf16.mxu1 %v1864_v53 }
 0x1b3   : > { %1036 = vmatmul.mubr.bf16.gmra.mxu0 %v1866_v54  ;;  %1100 = vmatmul.mubr.bf16.gmra.mxu1 %v1867_v55 }
 0x1b4   : > { %1043 = vmatprep.mubr.bf16.mxu0 %v1868_v56  ;;  %1107 = vmatprep.mubr.bf16.mxu1 %v1870_v57  ;;  %v736_v56 = vld [vmem:[%s2239_s13 + $0x28] sm:$0xff] }
 0x1bb   : > { %1044 = vmatmul.mubr.bf16.gmra.mxu0 %v1872_v7  ;;  %1108 = vmatmul.mubr.bf16.gmra.mxu1 %v1873_v58  ;;  %v752_v7 = vld [vmem:[%s2239_s13 + $0xa8] sm:$0xff] }
 0x1bc   : > { %1051 = vmatprep.mubr.bf16.mxu0 %v1874_v59  ;;  %1115 = vmatprep.mubr.bf16.mxu1 %v1876_v60 }
 0x1c3   : > { %1052 = vmatmul.mubr.bf16.gmra.mxu0 %v1878_v61  ;;  %1116 = vmatmul.mubr.bf16.gmra.mxu1 %v1879_v63 }
 0x1c4   : > { %1059 = vmatprep.mubr.bf16.mxu0 %v1880_v1  ;;  %1123 = vmatprep.mubr.bf16.mxu1 %v1882_v4 }
 0x1cb   : > { %1060 = vmatmul.mubr.bf16.gmra.mxu0 %v1884_v6  ;;  %1124 = vmatmul.mubr.bf16.gmra.mxu1 %v1885_v8  ;;  %v737_v6 = vld [vmem:[%s2239_s13 + $0x30] sm:$0xff] }
 0x253   : > { %v1578_v9 = vpop.f32.mrf.mxu0  ;;  %v1626_v10 = vpop.f32.mrf.mxu1 }
 0x255   : > { %v1579_v14 = vpop.f32.mrf.mxu0  ;;  %v1627_v17 = vpop.f32.mrf.mxu1 }
 0x256   : > { %v1580_v18 = vadd.f32 %v1579_v14, %v1578_v9  ;;  %v1628_v20 = vadd.f32 %v1627_v17, %v1626_v10  ;;  %v753_v9 = vld [vmem:[%s2239_s13 + $0xb0] sm:$0xff] }
 0x257   : > { %v1581_v3 = vpop.f32.mrf.mxu0  ;;  %v1629_v21 = vpop.f32.mrf.mxu1 }
 0x258   : > { %v1132_v11 = vadd.f32 %v1580_v18, %v731_v12  ;;  %v1148_v22 = vadd.f32 %v1628_v20, %v747_v16 }
 0x259   : > { %v1582_v2 = vpop.f32.mrf.mxu0  ;;  %v1630_v62 = vpop.f32.mrf.mxu1 }
 0x25a   : > { %1164 = vst [vmem:[%s2239_s13] sm:$0xff] %v1132_v11  ;;  %1180 = vst [vmem:[%s2239_s13 + $0x80] sm:$0xff] %v1148_v22  ;;  %v1583_v25 = vadd.f32 %v1582_v2, %v1581_v3  ;;  %v1631_v26 = vadd.f32 %v1630_v62, %v1629_v21  ;;  %v738_v3 = vld [vmem:[%s2239_s13 + $0x38] sm:$0xff] }
 0x25b   : > { %v1584_v27 = vpop.f32.mrf.mxu0  ;;  %v1632_v28 = vpop.f32.mrf.mxu1  ;;  %v754_v11 = vld [vmem:[%s2239_s13 + $0xb8] sm:$0xff] }
 0x25c   : > { %v1133_v13 = vadd.f32 %v1583_v25, %v732_v23  ;;  %v1149_v29 = vadd.f32 %v1631_v26, %v748_v24 }
 0x25d   : > { %v1585_v31 = vpop.f32.mrf.mxu0  ;;  %v1633_v33 = vpop.f32.mrf.mxu1 }
 0x25e   : > { %1165 = vst [vmem:[%s2239_s13 + $0x8] sm:$0xff] %v1133_v13  ;;  %1181 = vst [vmem:[%s2239_s13 + $0x88] sm:$0xff] %v1149_v29  ;;  %v1586_v34 = vadd.f32 %v1585_v31, %v1584_v27  ;;  %v1634_v37 = vadd.f32 %v1633_v33, %v1632_v28  ;;  %v739_v27 = vld [vmem:[%s2239_s13 + $0x40] sm:$0xff] }
 0x25f   : > { %v1587_v15 = vpop.f32.mrf.mxu0  ;;  %v1635_v38 = vpop.f32.mrf.mxu1  ;;  %v755_v13 = vld [vmem:[%s2239_s13 + $0xc0] sm:$0xff] }
 0x260   : > { %v1134_v39 = vadd.f32 %v1586_v34, %v733_v30  ;;  %v1150_v0 = vadd.f32 %v1634_v37, %v749_v32 }
 0x261   : > { %v1588_v41 = vpop.f32.mrf.mxu0  ;;  %v1636_v43 = vpop.f32.mrf.mxu1 }
 0x262   : > { %1166 = vst [vmem:[%s2239_s13 + $0x10] sm:$0xff] %v1134_v39  ;;  %1182 = vst [vmem:[%s2239_s13 + $0x90] sm:$0xff] %v1150_v0  ;;  %v1589_v44 = vadd.f32 %v1588_v41, %v1587_v15  ;;  %v1637_v19 = vadd.f32 %v1636_v43, %v1635_v38  ;;  %v740_v15 = vld [vmem:[%s2239_s13 + $0x48] sm:$0xff] }
 0x263   : > { %v1590_v35 = vpop.f32.mrf.mxu0  ;;  %v1638_v36 = vpop.f32.mrf.mxu1  ;;  %v756_v39 = vld [vmem:[%s2239_s13 + $0xc8] sm:$0xff] }
 0x264   : > { %v1135_v45 = vadd.f32 %v1589_v44, %v734_v40  ;;  %v1151_v46 = vadd.f32 %v1637_v19, %v750_v42 }
 0x265   : > { %v1591_v47 = vpop.f32.mrf.mxu0  ;;  %v1639_v49 = vpop.f32.mrf.mxu1 }
 0x266   : > { %1167 = vst [vmem:[%s2239_s13 + $0x18] sm:$0xff] %v1135_v45  ;;  %1183 = vst [vmem:[%s2239_s13 + $0x98] sm:$0xff] %v1151_v46  ;;  %v1592_v50 = vadd.f32 %v1591_v47, %v1590_v35  ;;  %v1640_v51 = vadd.f32 %v1639_v49, %v1638_v36  ;;  %v741_v35 = vld [vmem:[%s2239_s13 + $0x50] sm:$0xff] }
 0x267   : > { %v1593_v52 = vpop.f32.mrf.mxu0  ;;  %v1641_v53 = vpop.f32.mrf.mxu1  ;;  %v757_v45 = vld [vmem:[%s2239_s13 + $0xd0] sm:$0xff] }
 0x268   : > { %v1136_v54 = vadd.f32 %v1592_v50, %v735_v5  ;;  %v1152_v55 = vadd.f32 %v1640_v51, %v751_v48 }
 0x269   : > { %v1594_v57 = vpop.f32.mrf.mxu0  ;;  %v1642_v58 = vpop.f32.mrf.mxu1 }
 0x26a   : > { %1168 = vst [vmem:[%s2239_s13 + $0x20] sm:$0xff] %v1136_v54  ;;  %1184 = vst [vmem:[%s2239_s13 + $0xa0] sm:$0xff] %v1152_v55  ;;  %v1595_v59 = vadd.f32 %v1594_v57, %v1593_v52  ;;  %v1643_v60 = vadd.f32 %v1642_v58, %v1641_v53  ;;  %v742_v52 = vld [vmem:[%s2239_s13 + $0x58] sm:$0xff] }
 0x26b   : > { %v1596_v61 = vpop.f32.mrf.mxu0  ;;  %v1644_v63 = vpop.f32.mrf.mxu1  ;;  %v758_v54 = vld [vmem:[%s2239_s13 + $0xd8] sm:$0xff] }
 0x26c   : > { %v1137_v1 = vadd.f32 %v1595_v59, %v736_v56  ;;  %v1153_v4 = vadd.f32 %v1643_v60, %v752_v7 }
 0x26d   : > { %v1597_v8 = vpop.f32.mrf.mxu0  ;;  %v1645_v10 = vpop.f32.mrf.mxu1 }
 0x26e   : > { %1169 = vst [vmem:[%s2239_s13 + $0x28] sm:$0xff] %v1137_v1  ;;  %1185 = vst [vmem:[%s2239_s13 + $0xa8] sm:$0xff] %v1153_v4  ;;  %v1598_v12 = vadd.f32 %v1597_v8, %v1596_v61  ;;  %v1646_v14 = vadd.f32 %v1645_v10, %v1644_v63  ;;  %v743_v61 = vld [vmem:[%s2239_s13 + $0x60] sm:$0xff] }
 0x26f   : > { %v1599_v16 = vpop.f32.mrf.mxu0  ;;  %v1647_v17 = vpop.f32.mrf.mxu1  ;;  %v759_v1 = vld [vmem:[%s2239_s13 + $0xe0] sm:$0xff] }
 0x270   : > { %v1138_v18 = vadd.f32 %v1598_v12, %v737_v6  ;;  %v1154_v20 = vadd.f32 %v1646_v14, %v753_v9 }
 0x271   : > { %v1600_v21 = vpop.f32.mrf.mxu0  ;;  %v1648_v22 = vpop.f32.mrf.mxu1 }
 0x272   : > { %1170 = vst [vmem:[%s2239_s13 + $0x30] sm:$0xff] %v1138_v18  ;;  %1186 = vst [vmem:[%s2239_s13 + $0xb0] sm:$0xff] %v1154_v20  ;;  %v1601_v23 = vadd.f32 %v1600_v21, %v1599_v16  ;;  %v1649_v2 = vadd.f32 %v1648_v22, %v1647_v17  ;;  %v744_v16 = vld [vmem:[%s2239_s13 + $0x68] sm:$0xff] }
 0x273   : > { %v1602_v24 = vpop.f32.mrf.mxu0  ;;  %v1650_v62 = vpop.f32.mrf.mxu1  ;;  %v760_v18 = vld [vmem:[%s2239_s13 + $0xe8] sm:$0xff] }
 0x274   : > { %v1139_v25 = vadd.f32 %v1601_v23, %v738_v3  ;;  %v1155_v26 = vadd.f32 %v1649_v2, %v754_v11 }
 0x275   : > { %v1603_v28 = vpop.f32.mrf.mxu0  ;;  %v1651_v29 = vpop.f32.mrf.mxu1 }
 0x276   : > { %1171 = vst [vmem:[%s2239_s13 + $0x38] sm:$0xff] %v1139_v25  ;;  %1187 = vst [vmem:[%s2239_s13 + $0xb8] sm:$0xff] %v1155_v26  ;;  %v1604_v30 = vadd.f32 %v1603_v28, %v1602_v24  ;;  %v1652_v31 = vadd.f32 %v1651_v29, %v1650_v62  ;;  %v745_v24 = vld [vmem:[%s2239_s13 + $0x70] sm:$0xff] }
 0x277   : > { %v1605_v32 = vpop.f32.mrf.mxu0  ;;  %v1653_v33 = vpop.f32.mrf.mxu1  ;;  %v761_v25 = vld [vmem:[%s2239_s13 + $0xf0] sm:$0xff] }
 0x278   : > { %v1140_v34 = vadd.f32 %v1604_v30, %v739_v27  ;;  %v1156_v37 = vadd.f32 %v1652_v31, %v755_v13 }
 0x279   : > { %v1606_v38 = vpop.f32.mrf.mxu0  ;;  %v1654_v0 = vpop.f32.mrf.mxu1 }
 0x27a   : > { %1172 = vst [vmem:[%s2239_s13 + $0x40] sm:$0xff] %v1140_v34  ;;  %1188 = vst [vmem:[%s2239_s13 + $0xc0] sm:$0xff] %v1156_v37  ;;  %v1607_v40 = vadd.f32 %v1606_v38, %v1605_v32  ;;  %v1655_v41 = vadd.f32 %v1654_v0, %v1653_v33  ;;  %v746_v32 = vld [vmem:[%s2239_s13 + $0x78] sm:$0xff] }
 0x27b   : > { %v1608_v42 = vpop.f32.mrf.mxu0  ;;  %v1656_v43 = vpop.f32.mrf.mxu1  ;;  %v762_v34 = vld [vmem:[%s2239_s13 + $0xf8] sm:$0xff] }
 0x27c   : > { %v1141_v44 = vadd.f32 %v1607_v40, %v740_v15  ;;  %v1157_v19 = vadd.f32 %v1655_v41, %v756_v39 }
 0x27d   : > { %v1609_v36 = vpop.f32.mrf.mxu0  ;;  %v1657_v46 = vpop.f32.mrf.mxu1 }
 0x27e   : > { %1173 = vst [vmem:[%s2239_s13 + $0x48] sm:$0xff] %v1141_v44  ;;  %1189 = vst [vmem:[%s2239_s13 + $0xc8] sm:$0xff] %v1157_v19  ;;  %v1610_v5 = vadd.f32 %v1609_v36, %v1608_v42  ;;  %v1658_v47 = vadd.f32 %v1657_v46, %v1656_v43 }
 0x27f   : > { %v1611_v48 = vpop.f32.mrf.mxu0  ;;  %v1659_v49 = vpop.f32.mrf.mxu1 }
 0x280   : > { %v1142_v50 = vadd.f32 %v1610_v5, %v741_v35  ;;  %v1158_v51 = vadd.f32 %v1658_v47, %v757_v45 }
 0x281   : > { %v1612_v53 = vpop.f32.mrf.mxu0  ;;  %v1660_v55 = vpop.f32.mrf.mxu1 }
 0x282   : > { %1174 = vst [vmem:[%s2239_s13 + $0x50] sm:$0xff] %v1142_v50  ;;  %1190 = vst [vmem:[%s2239_s13 + $0xd0] sm:$0xff] %v1158_v51  ;;  %v1613_v56 = vadd.f32 %v1612_v53, %v1611_v48  ;;  %v1661_v57 = vadd.f32 %v1660_v55, %v1659_v49 }
 0x283   : > { %v1614_v7 = vpop.f32.mrf.mxu0  ;;  %v1662_v58 = vpop.f32.mrf.mxu1 }
 0x284   : > { %v1143_v59 = vadd.f32 %v1613_v56, %v742_v52  ;;  %v1159_v60 = vadd.f32 %v1661_v57, %v758_v54 }
 0x285   : > { %v1615_v63 = vpop.f32.mrf.mxu0  ;;  %v1663_v4 = vpop.f32.mrf.mxu1 }
 0x286   : > { %1175 = vst [vmem:[%s2239_s13 + $0x58] sm:$0xff] %v1143_v59  ;;  %1191 = vst [vmem:[%s2239_s13 + $0xd8] sm:$0xff] %v1159_v60  ;;  %v1616_v6 = vadd.f32 %v1615_v63, %v1614_v7  ;;  %v1664_v8 = vadd.f32 %v1663_v4, %v1662_v58 }
 0x287   : > { %v1617_v9 = vpop.f32.mrf.mxu0  ;;  %v1665_v10 = vpop.f32.mrf.mxu1 }
 0x288   : > { %v1144_v12 = vadd.f32 %v1616_v6, %v743_v61  ;;  %v1160_v14 = vadd.f32 %v1664_v8, %v759_v1 }
 0x289   : > { %v1618_v17 = vpop.f32.mrf.mxu0  ;;  %v1666_v20 = vpop.f32.mrf.mxu1 }
 0x28a   : > { %1176 = vst [vmem:[%s2239_s13 + $0x60] sm:$0xff] %v1144_v12  ;;  %1192 = vst [vmem:[%s2239_s13 + $0xe0] sm:$0xff] %v1160_v14  ;;  %v1619_v3 = vadd.f32 %v1618_v17, %v1617_v9  ;;  %v1667_v21 = vadd.f32 %v1666_v20, %v1665_v10 }
 0x28b   : > { %v1620_v11 = vpop.f32.mrf.mxu0  ;;  %v1668_v22 = vpop.f32.mrf.mxu1 }
 0x28c   : > { %v1145_v23 = vadd.f32 %v1619_v3, %v744_v16  ;;  %v1161_v2 = vadd.f32 %v1667_v21, %v760_v18 }
 0x28d   : > { %v1621_v62 = vpop.f32.mrf.mxu0  ;;  %v1669_v26 = vpop.f32.mrf.mxu1 }
 0x28e   : > { %1177 = vst [vmem:[%s2239_s13 + $0x68] sm:$0xff] %v1145_v23  ;;  %1193 = vst [vmem:[%s2239_s13 + $0xe8] sm:$0xff] %v1161_v2  ;;  %v1622_v27 = vadd.f32 %v1621_v62, %v1620_v11  ;;  %v1670_v28 = vadd.f32 %v1669_v26, %v1668_v22 }
 0x28f   : > { %v1623_v13 = vpop.f32.mrf.mxu0  ;;  %v1671_v29 = vpop.f32.mrf.mxu1 }
 0x290   : > { %v1146_v30 = vadd.f32 %v1622_v27, %v745_v24  ;;  %v1162_v31 = vadd.f32 %v1670_v28, %v761_v25 }
 0x291   : > { %v1624_v33 = vpop.f32.mrf.mxu0  ;;  %v1672_v37 = vpop.f32.mrf.mxu1 }
 0x292   : > { %1178 = vst [vmem:[%s2239_s13 + $0x70] sm:$0xff] %v1146_v30  ;;  %1194 = vst [vmem:[%s2239_s13 + $0xf0] sm:$0xff] %v1162_v31  ;;  %v1625_v15 = vadd.f32 %v1624_v33, %v1623_v13  ;;  %v1673_v38 = vadd.f32 %v1672_v37, %v1671_v29  ;;  %1199 = sbr.rel (%p1552_p5) target bundleno = 742 (0x2e6), region = 44 }
 0x294   : > { %v1147_v39 = vadd.f32 %v1625_v15, %v746_v32  ;;  %v1163_v0 = vadd.f32 %v1673_v38, %v762_v34 }
 0x296   : > { %1179 = vst [vmem:[%s2239_s13 + $0x78] sm:$0xff] %v1147_v39  ;;  %1195 = vst [vmem:[%s2239_s13 + $0xf8] sm:$0xff] %v1163_v0 }
 0x297   : > { %v1200_v40 = vld [vmem:[%s2239_s13] sm:$0xff]  ;;  %v1201_v41 = vld [vmem:[%s2239_s13 + $0x8] sm:$0xff]  ;;  %v1202_v42 = vld [vmem:[%s2239_s13 + $0x10] sm:$0xff]  ;;  %vm1338_vm0 = vcmask 1040384  }
 0x298   : > { %v1203_v43 = vld [vmem:[%s2239_s13 + $0x18] sm:$0xff]  ;;  %v1232_v44 = vadd.f32 %v1201_v41, %v1200_v40  ;;  %v1269_v19 = vmul.f32 %v1200_v40, %v1200_v40  ;;  %v1270_v35 = vmul.f32 %v1201_v41, %v1201_v41  ;;  %v1271_v36 = vmul.f32 %v1202_v42, %v1202_v42  ;;  %v1204_v45 = vld [vmem:[%s2239_s13 + $0x20] sm:$0xff]  ;;  %v1205_v48 = vld [vmem:[%s2239_s13 + $0x28] sm:$0xff] }
 0x299   : > { %v1272_v5 = vmul.f32 %v1203_v43, %v1203_v43  ;;  %v1273_v50 = vmul.f32 %v1204_v45, %v1204_v45  ;;  %v1206_v52 = vld [vmem:[%s2239_s13 + $0x30] sm:$0xff]  ;;  %v1274_v54 = vmul.f32 %v1205_v48, %v1205_v48  ;;  %v1207_v56 = vld [vmem:[%s2239_s13 + $0x38] sm:$0xff]  ;;  %v1208_v59 = vld [vmem:[%s2239_s13 + $0x40] sm:$0xff] }
 0x29a   : > { %v1233_v46 = vadd.f32 %v1232_v44, %v1202_v42  ;;  %v1301_v47 = vadd.f32 %v1270_v35, %v1269_v19  ;;  %v1275_v7 = vmul.f32 %v1206_v52, %v1206_v52  ;;  %v1276_v61 = vmul.f32 %v1207_v56, %v1207_v56  ;;  %v1209_v1 = vld [vmem:[%s2239_s13 + $0x48] sm:$0xff]  ;;  %v1210_v9 = vld [vmem:[%s2239_s13 + $0x50] sm:$0xff]  ;;  %v1211_v16 = vld [vmem:[%s2239_s13 + $0x58] sm:$0xff] }
 0x29b   : > { %v1277_v6 = vmul.f32 %v1208_v59, %v1208_v59  ;;  %v1278_v12 = vmul.f32 %v1209_v1, %v1209_v1  ;;  %v1279_v18 = vmul.f32 %v1210_v9, %v1210_v9  ;;  %v1212_v3 = vld [vmem:[%s2239_s13 + $0x60] sm:$0xff]  ;;  %v1280_v11 = vmul.f32 %v1211_v16, %v1211_v16  ;;  %v1213_v23 = vld [vmem:[%s2239_s13 + $0x68] sm:$0xff]  ;;  %v1214_v25 = vld [vmem:[%s2239_s13 + $0x70] sm:$0xff] }
 0x29c   : > { %v1234_v49 = vadd.f32 %v1233_v46, %v1203_v43  ;;  %v1302_v51 = vadd.f32 %v1301_v47, %v1271_v36  ;;  %v1281_v24 = vmul.f32 %v1212_v3, %v1212_v3  ;;  %v1282_v27 = vmul.f32 %v1213_v23, %v1213_v23  ;;  %v1216_v32 = vld [vmem:[%s2239_s13 + $0x80] sm:$0xff]  ;;  %v1217_v15 = vld [vmem:[%s2239_s13 + $0x88] sm:$0xff]  ;;  %v1218_v40 = vld [vmem:[%s2239_s13 + $0x90] sm:$0xff] }
 0x29d   : > { %v1215_v13 = vld [vmem:[%s2239_s13 + $0x78] sm:$0xff]  ;;  %v1283_v30 = vmul.f32 %v1214_v25, %v1214_v25  ;;  %v1285_v39 = vmul.f32 %v1216_v32, %v1216_v32  ;;  %v1286_v42 = vmul.f32 %v1217_v15, %v1217_v15  ;;  %v1287_v35 = vmul.f32 %v1218_v40, %v1218_v40 }
 0x29e   : > { %v1235_v53 = vadd.f32 %v1234_v49, %v1204_v45  ;;  %v1303_v55 = vadd.f32 %v1302_v51, %v1272_v5  ;;  %v1284_v34 = vmul.f32 %v1215_v13, %v1215_v13  ;;  %v1219_v44 = vld [vmem:[%s2239_s13 + $0x98] sm:$0xff]  ;;  %v1220_v45 = vld [vmem:[%s2239_s13 + $0xa0] sm:$0xff] }
 0x29f   : > { %v1288_v5 = vmul.f32 %v1219_v44, %v1219_v44 }
 0x2a0   : > { %v1236_v57 = vadd.f32 %v1235_v53, %v1205_v48  ;;  %v1304_v58 = vadd.f32 %v1303_v55, %v1273_v50  ;;  %v1221_v48 = vld [vmem:[%s2239_s13 + $0xa8] sm:$0xff]  ;;  %v1289_v50 = vmul.f32 %v1220_v45, %v1220_v45 }
 0x2a2   : > { %v1237_v60 = vadd.f32 %v1236_v57, %v1206_v52  ;;  %v1305_v63 = vadd.f32 %v1304_v58, %v1274_v54  ;;  %v1222_v52 = vld [vmem:[%s2239_s13 + $0xb0] sm:$0xff]  ;;  %v1290_v54 = vmul.f32 %v1221_v48, %v1221_v48 }
 0x2a4   : > { %v1238_v4 = vadd.f32 %v1237_v60, %v1207_v56  ;;  %v1306_v8 = vadd.f32 %v1305_v63, %v1275_v7  ;;  %v1223_v56 = vld [vmem:[%s2239_s13 + $0xb8] sm:$0xff]  ;;  %v1291_v7 = vmul.f32 %v1222_v52, %v1222_v52 }
 0x2a6   : > { %v1239_v10 = vadd.f32 %v1238_v4, %v1208_v59  ;;  %v1307_v14 = vadd.f32 %v1306_v8, %v1276_v61  ;;  %v1224_v59 = vld [vmem:[%s2239_s13 + $0xc0] sm:$0xff]  ;;  %v1292_v61 = vmul.f32 %v1223_v56, %v1223_v56 }
 0x2a8   : > { %v1240_v17 = vadd.f32 %v1239_v10, %v1209_v1  ;;  %v1308_v20 = vadd.f32 %v1307_v14, %v1277_v6  ;;  %v1225_v1 = vld [vmem:[%s2239_s13 + $0xc8] sm:$0xff]  ;;  %v1293_v6 = vmul.f32 %v1224_v59, %v1224_v59 }
 0x2aa   : > { %v1241_v21 = vadd.f32 %v1240_v17, %v1210_v9  ;;  %v1309_v22 = vadd.f32 %v1308_v20, %v1278_v12  ;;  %v1226_v9 = vld [vmem:[%s2239_s13 + $0xd0] sm:$0xff]  ;;  %v1294_v12 = vmul.f32 %v1225_v1, %v1225_v1 }
 0x2ac   : > { %v1242_v2 = vadd.f32 %v1241_v21, %v1211_v16  ;;  %v1310_v62 = vadd.f32 %v1309_v22, %v1279_v18  ;;  %v1227_v16 = vld [vmem:[%s2239_s13 + $0xd8] sm:$0xff]  ;;  %v1295_v18 = vmul.f32 %v1226_v9, %v1226_v9 }
 0x2ae   : > { %v1243_v26 = vadd.f32 %v1242_v2, %v1212_v3  ;;  %v1311_v28 = vadd.f32 %v1310_v62, %v1280_v11  ;;  %v1228_v3 = vld [vmem:[%s2239_s13 + $0xe0] sm:$0xff]  ;;  %v1296_v11 = vmul.f32 %v1227_v16, %v1227_v16 }
 0x2b0   : > { %v1244_v29 = vadd.f32 %v1243_v26, %v1213_v23  ;;  %v1312_v31 = vadd.f32 %v1311_v28, %v1281_v24  ;;  %v1229_v23 = vld [vmem:[%s2239_s13 + $0xe8] sm:$0xff]  ;;  %v1297_v24 = vmul.f32 %v1228_v3, %v1228_v3 }
 0x2b2   : > { %v1245_v33 = vadd.f32 %v1244_v29, %v1214_v25  ;;  %v1313_v37 = vadd.f32 %v1312_v31, %v1282_v27  ;;  %v1230_v25 = vld [vmem:[%s2239_s13 + $0xf0] sm:$0xff]  ;;  %v1298_v27 = vmul.f32 %v1229_v23, %v1229_v23 }
 0x2b4   : > { %v1246_v38 = vadd.f32 %v1245_v33, %v1215_v13  ;;  %v1314_v0 = vadd.f32 %v1313_v37, %v1283_v30  ;;  %v1231_v13 = vld [vmem:[%s2239_s13 + $0xf8] sm:$0xff]  ;;  %v1299_v30 = vmul.f32 %v1230_v25, %v1230_v25 }
 0x2b5   : > { %v1300_v33 = vmul.f32 %v1231_v13, %v1231_v13 }
 0x2b6   : > { %v1247_v41 = vadd.f32 %v1246_v38, %v1216_v32  ;;  %v1315_v43 = vadd.f32 %v1314_v0, %v1284_v34 }
 0x2b8   : > { %v1248_v19 = vadd.f32 %v1247_v41, %v1217_v15  ;;  %v1316_v36 = vadd.f32 %v1315_v43, %v1285_v39 }
 0x2ba   : > { %v1249_v46 = vadd.f32 %v1248_v19, %v1218_v40  ;;  %v1317_v47 = vadd.f32 %v1316_v36, %v1286_v42 }
 0x2bc   : > { %v1250_v49 = vadd.f32 %v1249_v46, %v1219_v44  ;;  %v1318_v51 = vadd.f32 %v1317_v47, %v1287_v35 }
 0x2be   : > { %v1251_v53 = vadd.f32 %v1250_v49, %v1220_v45  ;;  %v1319_v55 = vadd.f32 %v1318_v51, %v1288_v5 }
 0x2c0   : > { %v1252_v57 = vadd.f32 %v1251_v53, %v1221_v48  ;;  %v1320_v58 = vadd.f32 %v1319_v55, %v1289_v50 }
 0x2c2   : > { %v1253_v60 = vadd.f32 %v1252_v57, %v1222_v52  ;;  %v1321_v63 = vadd.f32 %v1320_v58, %v1290_v54 }
 0x2c4   : > { %v1254_v4 = vadd.f32 %v1253_v60, %v1223_v56  ;;  %v1322_v8 = vadd.f32 %v1321_v63, %v1291_v7 }
 0x2c6   : > { %v1255_v10 = vadd.f32 %v1254_v4, %v1224_v59  ;;  %v1323_v14 = vadd.f32 %v1322_v8, %v1292_v61 }
 0x2c8   : > { %v1256_v17 = vadd.f32 %v1255_v10, %v1225_v1  ;;  %v1324_v20 = vadd.f32 %v1323_v14, %v1293_v6 }
 0x2ca   : > { %v1257_v21 = vadd.f32 %v1256_v17, %v1226_v9  ;;  %v1325_v22 = vadd.f32 %v1324_v20, %v1294_v12 }
 0x2cc   : > { %v1258_v2 = vadd.f32 %v1257_v21, %v1227_v16  ;;  %v1326_v62 = vadd.f32 %v1325_v22, %v1295_v18 }
 0x2ce   : > { %v1259_v26 = vadd.f32 %v1258_v2, %v1228_v3  ;;  %v1327_v28 = vadd.f32 %v1326_v62, %v1296_v11 }
 0x2d0   : > { %v1260_v29 = vadd.f32 %v1259_v26, %v1229_v23  ;;  %v1328_v31 = vadd.f32 %v1327_v28, %v1297_v24 }
 0x2d2   : > { %v1261_v32 = vadd.f32 %v1260_v29, %v1230_v25  ;;  %v1329_v34 = vadd.f32 %v1328_v31, %v1298_v27 }
 0x2d4   : > { %v1262_v37 = vadd.f32 %v1261_v32, %v1231_v13  ;;  %v1330_v15 = vadd.f32 %v1329_v34, %v1299_v30 }
 0x2d6   : > { %v1263_v38 = vrot.slane %v1262_v37, 4  ;;  %v1331_v39 = vadd.f32 %v1330_v15, %v1300_v33 }
 0x2d8   : > { %v1264_v0 = vadd.f32 %v1263_v38, %v1262_v37  ;;  %v1332_v40 = vrot.slane %v1331_v39, 4 }
 0x2da   : > { %v1265_v41 = vrot.slane %v1264_v0, 2  ;;  %v1333_v42 = vadd.f32 %v1332_v40, %v1331_v39 }
 0x2dc   : > { %v1266_v43 = vadd.f32 %v1265_v41, %v1264_v0  ;;  %v1334_v44 = vrot.slane %v1333_v42, 2 }
 0x2de   : > { %v1267_v19 = vrot.slane %v1266_v43, 1  ;;  %v1335_v35 = vadd.f32 %v1334_v44, %v1333_v42 }
 0x2e0   : > { %v1268_v36 = vadd.f32 %v1267_v19, %v1266_v43  ;;  %v1336_v45 = vrot.slane %v1335_v35, 1 }
 0x2e2   : > { %v1337_v46 = vadd.f32 %v1336_v45, %v1335_v35 }
 0x2e4   : > { %v1339_v5 = vsel %vm1338_vm0, %v1268_v36, %v1337_v46 }
 0x2e5   : > { %1340 = vst [vmem:[%s2241_s8] sm:$0x3] %v1339_v5 }
 0x2e6 PF: > { %s1561_s21 = sshll.u32 %s2052_s22, 12  ;;  %s1360_s7 = sshll.u32 %s2239_s13, 4  ;;  %s2591_s7 = int_to_ptr.vmem [resolvable:$true] %s1360_s7 }
 0x2e7   : > { %s2588_s24 = scalar_lea.hbm %s2674_s3, %s1561_s21  ;;  %s1342_s20 = scalar_lea.sflag [#allocation4], %s2229_s30 }
 0x2e8   : > { %s1914_s29 = scalar_lea.vmem %s2591_s7, 4096  ;;  %s2073_s12 = smov [#allocation5]  }
 0x2e9   : > { %p1915_p8 = scmp.ne.s32.totalorder %s2591_s7, %s1914_s29  ;;  %s1918_s27 = sshll.u32 %s2073_s12, 4  ;;  %s1919_s27 = int_to_ptr.vmem [resolvable:$false] %s1918_s27 }
 0x2ea   : > { %s1920_s26 = scalar_lea.vmem %s1919_s27, 8192  ;;  %p1921_p3 = scmp.lt.s32.totalorder %s2591_s7, %s1919_s27 }
 0x2eb   : > { %p1916_p9 = pnand %p1915_p8, %p2184_p12  ;;  %p1922_p11 = scmp.lt.s32.totalorder %s1920_s26, %s1914_s29 }
 0x2ed   : > { %p1917_p10 = pneg %p1916_p9  ;;  %p1923_p13 = por %p1922_p11, %p1921_p3 }
 0x2ef   : > { %p1924_p0 = pnand %p1923_p13, %p1917_p10 }
 0x2f1   : > { %1927 = shalt.err (!%p1924_p0)
}
 0x2f2   : > { %s1928_s28 = scalar_lea.hbm %s2588_s24, 4096  ;;  %s1932_s18 = scalar_lea.hbm %s2674_s3, 8192 }
 0x2f3   : > { %p1929_p1 = scmp.ne.s32.totalorder %s2588_s24, %s1928_s28  ;;  %p1933_p7 = scmp.lt.s32.totalorder %s2588_s24, %s2674_s3 }
 0x2f4   : > { %p1934_p5 = scmp.lt.s32.totalorder %s1932_s18, %s1928_s28 }
 0x2f5   : > { %p1930_p6 = pnand %p1929_p1, %p2184_p12 }
 0x2f6   : > { %p1935_p8 = por %p1934_p5, %p1933_p7 }
 0x2f7   : > { %p1931_p4 = pneg %p1930_p6 }
 0x2f9   : > { %p1936_p9 = pnand %p1935_p8, %p1931_p4 }
 0x2fb   : > { %1939 = shalt.err (!%p1936_p9)
}
 0x2fc   : > { %s2074_s9 = smov 128   ;;  %s2075_s10 = smov 8  }
 0x2fd   : > { %1692 = dma.vmem_to_hbm [thread:$0]  (%p2184_p12), %s2591_s7, 4096, %s2588_s24, %s1342_s20, %s2074_s9, %s2074_s9, %s2075_s10  }
 0x2fe   : > { %s1557_s29 = sshll.u32 %s2052_s22, 5  ;;  %s1376_s12 = sshll.u32 %s2241_s8, 4  ;;  %s1377_s12 = int_to_ptr.vmem [resolvable:$true] %s1376_s12 }
 0x2ff   : > { %s1374_s28 = scalar_lea.hbm %s2675_s4, %s1557_s29  ;;  %s1347_s6 = scalar_lea.sflag [#allocation7], %s2229_s30 }
 0x300   : > { %s1940_s13 = scalar_lea.vmem %s1377_s12, 32  ;;  %s2076_s18 = smov [#allocation6]  }
 0x301   : > { %p1941_p10 = scmp.ne.s32.totalorder %s1377_s12, %s1940_s13  ;;  %s1944_s5 = sshll.u32 %s2076_s18, 4  ;;  %s1945_s5 = int_to_ptr.vmem [resolvable:$false] %s1944_s5 }
 0x302   : > { %s1946_s21 = scalar_lea.vmem %s1945_s5, 64  ;;  %p1947_p13 = scmp.lt.s32.totalorder %s1377_s12, %s1945_s5 }
 0x303   : > { %p1942_p3 = pnand %p1941_p10, %p2184_p12  ;;  %p1948_p0 = scmp.lt.s32.totalorder %s1946_s21, %s1940_s13 }
 0x305   : > { %p1943_p11 = pneg %p1942_p3  ;;  %p1949_p1 = por %p1948_p0, %p1947_p13 }
 0x307   : > { %p1950_p6 = pnand %p1949_p1, %p1943_p11 }
 0x309   : > { %1953 = shalt.err (!%p1950_p6)
}
 0x30a   : > { %s1954_s22 = scalar_lea.hbm %s1374_s28, 32  ;;  %s1958_s24 = scalar_lea.hbm %s2675_s4, 64 }
 0x30b   : > { %p1955_p4 = scmp.ne.s32.totalorder %s1374_s28, %s1954_s22  ;;  %p1959_p8 = scmp.lt.s32.totalorder %s1374_s28, %s2675_s4 }
 0x30c   : > { %p1960_p9 = scmp.lt.s32.totalorder %s1958_s24, %s1954_s22 }
 0x30d   : > { %p1956_p7 = pnand %p1955_p4, %p2184_p12 }
 0x30e   : > { %p1961_p10 = por %p1960_p9, %p1959_p8 }
 0x30f   : > { %p1957_p5 = pneg %p1956_p7 }
 0x311   : > { %p1962_p3 = pnand %p1961_p10, %p1957_p5 }
 0x313   : > { %1965 = shalt.err (!%p1962_p3)
}
 0x314   : > { %1693 = dma.vmem_to_hbm [thread:$0]  (%p2184_p12), %s1377_s12, 32, %s1374_s28, %s1347_s6  }
 0x315 PF: > { %p1708_p11 = scmp.ge.s32.totalorder %s2064_s25, 2  ;;  %s1388_s9 = sand.u32 1, %s2024_s15  }
 0x316   : > { %s1389_s10 = scalar_lea.sflag [#allocation4], %s1388_s9 }
 0x317   : > { %p1701_p13 = pnand %p1708_p11, %p2197_p2 }
 0x319   : > { %p1702_p0 = pneg %p1701_p13 }
 0x31b   : > { %2015 = dma.done.wait (%p1702_p0), %s1389_s10, 4096  }
 0x31c   : > { %2017 = vsyncadd (%p1702_p0), %s1389_s10, 4294963200  ;;  %s1398_s29 = scalar_lea.sflag [#allocation7], %s1388_s9 }
 0x31d   : > { %2019 = dma.done.wait (%p1702_p0), %s1398_s29, 32  }
 0x31e   : > { %2021 = vsyncadd (%p1702_p0), %s1398_s29, 4294967264  ;;  %s24_s25 = sadd.s32 1, %s2064_s25   ;;  %s2691_s11 = sld [smem:[#allocation15_spill]] }
 0x31f   : > { %p21_p1 = scmp.ge.s32.totalorder %s24_s25, 6   ;;  %s2692_s12 = sld [smem:[#allocation11_spill]] }
 0x320   : > { %s2693_s20 = sld [smem:[#allocation16_spill]]  ;;  %s2697_s15 = smov %s2028_s16 }
 0x321   : > { %s2694_s22 = sld [smem:[#allocation12_spill]]  ;;  %s2698_s16 = smov %s2032_s17 }
 0x322   : > { %s2695_s14 = sld [smem:[#allocation13_spill]]  ;;  %s2700_s18 = smov %s2040_s19 }
 0x323   : > { %s2696_s24 = sld [smem:[#allocation14_spill]]  ;;  %s2702_s21 = smov %s2056_s23 }
 0x324   : > { %s2699_s17 = smov %s2691_s11  ;;  %23 = sbr.rel (!%p21_p1) target bundleno = 11 (0xb), region = 105 }
 0x325   : > { %s2701_s19 = smov %s2692_s12 }
 0x328   : > { %s2703_s23 = smov %s2695_s14 }
 0x329   :  { %1403 = vsyncpa [#allocation3], 1 }
 0x32a   :  { %1405 = vsyncpa [#allocation3 + $0x1], 1 }
 0x32b   :  { %1406 = vsyncpa [#allocation4], 1 }
 0x32c   :  { %1408 = vsyncpa [#allocation4 + $0x1], 1 }
 0x32d   :  { %1409 = vsyncpa [#allocation7], 1 }
 0x32e   :  { %1411 = vsyncpa [#allocation7 + $0x1], 1 }

</bundles_post_ra>
